<compile_context>
chip_gen: v6e
topology: v6e:2x2x1
jax: 0.10.0
libtpu: 0.0.40
codegen_flags: <defaults>
</compile_context>

<pallas_src>
import functools

import jax
import jax.numpy as jnp
from jax.experimental import pallas as pl
from jax.experimental.pallas import tpu as pltpu

_EPS = 1e-5
_TK = 512          # K tile used when K is large
_TK_SPLIT = 1024   # only tile K above this (toy config stays single-block)


def _round_up(a, b):
    return (a + b - 1) // b * b


def _lane_cfg(m):
    """Lane (last-dim) tile size and padded extent for a spatial length m."""
    if m >= 1024:
        tl = 512
    elif m >= 256:
        tl = 256
    else:
        tl = 128
    return tl, _round_up(m, tl)


# ----------------------------------------------------------------------------
# glue: layout helpers (pure data movement / tiny reductions, XLA)
# ----------------------------------------------------------------------------
def _flatten_conv_w(w):
    """(Cout, Cin, KH, KW) torch layout -> (Cout, KH*KW*Cin), tap-major."""
    cout, cin, kh, kw = w.shape
    return jnp.transpose(w, (0, 2, 3, 1)).reshape(cout, kh * kw * cin)


def _taps(x_cm, n, h, w, kh, kw, sh, sw, pad):
    """x_cm: (C, N*H*W) -> (KH*KW, C, N*Ho*Wo) stacked taps (zero padding)."""
    c = x_cm.shape[0]
    x4 = x_cm.reshape(c, n, h, w)
    if pad:
        x4 = jnp.pad(x4, ((0, 0), (0, 0), (pad, pad), (pad, pad)))
    ho = (h + 2 * pad - kh) // sh + 1
    wo = (w + 2 * pad - kw) // sw + 1
    taps = [x4[:, :, dy:dy + sh * ho:sh, dx:dx + sw * wo:sw]
            for dy in range(kh) for dx in range(kw)]
    st = jnp.stack(taps, axis=0)                    # (T, C, N, Ho, Wo)
    return st.reshape(kh * kw, c, n * ho * wo), ho, wo


def _bn_affine(f_cm, gamma, beta, eps=_EPS):
    """Training-mode BatchNorm (batch stats, biased var) -> y = x*scale + bias."""
    mean = jnp.mean(f_cm, axis=1)
    var = jnp.mean(jnp.square(f_cm - mean[:, None]), axis=1)
    scale = gamma / jnp.sqrt(var + eps)
    bias = beta - mean * scale
    return scale, bias


# ----------------------------------------------------------------------------
# Pallas kernels
# ----------------------------------------------------------------------------
def fused_matmul(w, x, scale=None, bias=None):
    """out = w @ prologue(x) with prologue = relu(x*scale + bias) if scale given.

    w: (Cout, K), x: (K, M) -> (Cout, M).  M (spatial) lives in lanes, so both
    the big input and the output are lane-dense without padding Cout.  K gets
    tiled with an f32 VMEM accumulator only when large.
    """
    cout, k = w.shape
    k2, m = x.shape
    assert k == k2
    has_pro = scale is not None
    if has_pro and bias is None:
        bias = jnp.zeros((k,), jnp.float32)

    tl, mp = _lane_cfg(m)
    if mp != m:
        x = jnp.pad(x, ((0, 0), (0, mp - m)))

    if k > _TK_SPLIT:
        tk = _TK
        kp = _round_up(k, tk)
        w = jnp.pad(w, ((0, 0), (0, kp - k)))
        x = jnp.pad(x, ((0, kp - k), (0, 0)))
        if has_pro:
            scale = jnp.pad(scale, (0, kp - k), constant_values=1.0)
            bias = jnp.pad(bias, (0, kp - k))
    else:
        tk, kp = k, k
    nk = kp // tk

    def kernel(*refs):
        if has_pro:
            w_ref, x_ref, s_ref, b_ref, o_ref, acc_ref = refs
        else:
            w_ref, x_ref, o_ref, acc_ref = refs
        kk = pl.program_id(1)

        @pl.when(kk == 0)
        def _():
            acc_ref[...] = jnp.zeros_like(acc_ref)

        xv = x_ref[...]
        if has_pro:
            xv = jnp.maximum(xv * s_ref[...] + b_ref[...], 0.0)
        acc_ref[...] += jnp.dot(w_ref[...], xv,
                                preferred_element_type=jnp.float32)

        @pl.when(kk == pl.num_programs(1) - 1)
        def _():
            o_ref[...] = acc_ref[...]

    in_specs = [
        pl.BlockSpec((cout, tk), lambda i, kk: (0, kk)),
        pl.BlockSpec((tk, tl), lambda i, kk: (kk, i)),
    ]
    operands = [w, x]
    if has_pro:
        in_specs += [pl.BlockSpec((tk, 1), lambda i, kk: (kk, 0)),
                     pl.BlockSpec((tk, 1), lambda i, kk: (kk, 0))]
        operands += [scale.reshape(kp, 1), bias.reshape(kp, 1)]

    out = pl.pallas_call(
        kernel,
        out_shape=jax.ShapeDtypeStruct((cout, mp), jnp.float32),
        grid=(mp // tl, nk),
        in_specs=in_specs,
        out_specs=pl.BlockSpec((cout, tl), lambda i, kk: (0, i)),
        scratch_shapes=[pltpu.VMEM((cout, tl), jnp.float32)],
        compiler_params=pltpu.CompilerParams(
            dimension_semantics=("parallel", "arbitrary")),
    )(*operands)
    return out[:, :m]


def fused_pool(taps, scale, bias, op):
    """relu(taps*scale + bias) reduced over the tap axis ('max' | 'mean').

    taps: (T, C, M), scale/bias: (C,) (bias may be None) -> (C, M).
    Taps are indexed on the leading (slab) axis, so this is pure VPU work on
    lane-dense (C, TL) tiles.
    """
    t, c, m = taps.shape
    if bias is None:
        bias = jnp.zeros((c,), jnp.float32)
    tl, mp = _lane_cfg(m)
    if mp != m:
        taps = jnp.pad(taps, ((0, 0), (0, 0), (0, mp - m)))

    def kernel(x_ref, s_ref, b_ref, o_ref):
        s = s_ref[...]
        b = b_ref[...]
        acc = jnp.maximum(x_ref[0] * s + b, 0.0)
        for j in range(1, t):
            y = jnp.maximum(x_ref[j] * s + b, 0.0)
            acc = jnp.maximum(acc, y) if op == "max" else acc + y
        if op == "mean":
            acc = acc * (1.0 / t)
        o_ref[...] = acc

    out = pl.pallas_call(
        kernel,
        out_shape=jax.ShapeDtypeStruct((c, mp), jnp.float32),
        grid=(mp // tl,),
        in_specs=[pl.BlockSpec((t, c, tl), lambda i: (0, 0, i)),
                  pl.BlockSpec((c, 1), lambda i: (0, 0)),
                  pl.BlockSpec((c, 1), lambda i: (0, 0))],
        out_specs=pl.BlockSpec((c, tl), lambda i: (0, i)),
        compiler_params=pltpu.CompilerParams(dimension_semantics=("parallel",)),
    )(taps, scale.reshape(c, 1), bias.reshape(c, 1))
    return out[:, :m]


def fused_head(f, scale, bias, pool_mat, wfc, bfc):
    """norm5+ReLU -> per-image global average pool -> linear classifier.

    f: (C, N*HW), pool_mat: (N*HW, N) constant averaging matrix,
    wfc: (num_classes, C), bfc: (num_classes,) -> (num_classes, N).
    """
    c, m = f.shape
    nc = wfc.shape[0]
    n = pool_mat.shape[1]

    def kernel(x_ref, s_ref, b_ref, p_ref, w_ref, fb_ref, o_ref):
        y = jnp.maximum(x_ref[...] * s_ref[...] + b_ref[...], 0.0)
        pooled = jnp.dot(y, p_ref[...], preferred_element_type=jnp.float32)
        o_ref[...] = (jnp.dot(w_ref[...], pooled,
                              preferred_element_type=jnp.float32) + fb_ref[...])

    return pl.pallas_call(
        kernel,
        out_shape=jax.ShapeDtypeStruct((nc, n), jnp.float32),
        grid=(1,),
        in_specs=[pl.BlockSpec((c, m), lambda i: (0, 0)),
                  pl.BlockSpec((c, 1), lambda i: (0, 0)),
                  pl.BlockSpec((c, 1), lambda i: (0, 0)),
                  pl.BlockSpec((m, n), lambda i: (0, 0)),
                  pl.BlockSpec((nc, c), lambda i: (0, 0)),
                  pl.BlockSpec((nc, 1), lambda i: (0, 0))],
        out_specs=pl.BlockSpec((nc, n), lambda i: (0, 0)),
    )(f, scale.reshape(c, 1), bias.reshape(c, 1), pool_mat, wfc,
      bfc.reshape(nc, 1))


# ----------------------------------------------------------------------------
# DenseNet forward
# ----------------------------------------------------------------------------
def densenet_forward(x_nchw, params, cfg):
    p = params
    n, cin, h, w = x_nchw.shape
    # NCHW -> (C, N*H*W): channels in sublanes, flattened spatial in lanes.
    x = jnp.transpose(x_nchw, (1, 0, 2, 3)).reshape(cin, n * h * w)
    x = x.astype(jnp.float32)

    # ---- stem: conv0 -> norm0 -> relu0 -> maxpool(3,2,1) -------------------
    t0, ho, wo = _taps(x, n, h, w, 7, 7, 2, 2, 3)
    c0 = fused_matmul(_flatten_conv_w(p["conv0"]), t0.reshape(49 * cin, -1))
    h, w = ho, wo
    s0, b0 = _bn_affine(c0, p["norm0_g"], p["norm0_b"])
    # Shift so zero-padded pool taps map to relu(0) = 0 exactly (gamma != 0),
    # then BN scale + ReLU + max-reduce happen inside the pool kernel.
    c0s = c0 + (b0 / s0)[:, None]
    tp, ho, wo = _taps(c0s, n, h, w, 3, 3, 2, 2, 1)
    f = fused_pool(tp, s0, None, "max")
    h, w = ho, wo

    nblocks = len(cfg["block_config"])
    for bi, nl in enumerate(cfg["block_config"]):
        # ---- DenseBlock -----------------------------------------------------
        for li in range(nl):
            pref = f"block{bi}_layer{li}_"
            s1, b1 = _bn_affine(f, p[pref + "norm1_g"], p[pref + "norm1_b"])
            # norm1 -> relu1 -> conv1 (1x1): no im2col, BN/ReLU fused prologue.
            u = fused_matmul(_flatten_conv_w(p[pref + "conv1"]), f, s1, b1)
            s2, b2 = _bn_affine(u, p[pref + "norm2_g"], p[pref + "norm2_b"])
            # norm2 -> relu2 -> conv2 (3x3, pad=1): shift keeps the zero padding
            # of the post-ReLU map exact with a scale-only fused prologue.
            us = u + (b2 / s2)[:, None]
            c2 = p[pref + "conv2"].shape[1]
            t2, _, _ = _taps(us, n, h, w, 3, 3, 1, 1, 1)
            y = fused_matmul(_flatten_conv_w(p[pref + "conv2"]),
                             t2.reshape(9 * c2, -1), jnp.tile(s2, 9), None)
            # drop_rate == 0 -> dropout is identity
            f = jnp.concatenate([f, y], axis=0)

        # ---- Transition ------------------------------------------------------
        if bi != nblocks - 1:
            pref = f"trans{bi}_"
            st, bt = _bn_affine(f, p[pref + "norm_g"], p[pref + "norm_b"])
            # pool(conv1x1(relu(norm(f)))) == conv1x1(pool(relu(norm(f))));
            # pool first (BN/ReLU fused into the pool kernel), 4x less matmul.
            tt, ho, wo = _taps(f, n, h, w, 2, 2, 2, 2, 0)
            pooled = fused_pool(tt, st, bt, "mean")
            f = fused_matmul(_flatten_conv_w(p[pref + "conv"]), pooled)
            h, w = ho, wo

    # ---- norm5 -> relu -> global avg pool -> classifier ---------------------
    s5, b5 = _bn_affine(f, p["norm5_g"], p["norm5_b"])
    hw = h * w
    pool_mat = jnp.kron(jnp.eye(n, dtype=jnp.float32),
                        jnp.ones((hw, 1), jnp.float32) / hw)   # (N*HW, N)
    out = fused_head(f, s5, b5, pool_mat, p["fc_w"], p["fc_b"])  # (classes, N)
    return out.T                                                  # (N, classes)


# ----------------------------------------------------------------------------
# deterministic parameter init (torch layouts / init schemes; synthetic values)
# ----------------------------------------------------------------------------
def init_params(key, cfg):
    params = {}
    keys = iter(jax.random.split(key, 64))

    def conv_w(cout, cin, kh, kw):
        fan_in = cin * kh * kw
        std = (2.0 / fan_in) ** 0.5  # kaiming_normal_
        return jax.random.normal(next(keys), (cout, cin, kh, kw),
                                 jnp.float32) * std

    nif, gr, bs = cfg["num_init_features"], cfg["growth_rate"], cfg["bn_size"]

    params["conv0"] = conv_w(nif, 3, 7, 7)
    params["norm0_g"] = jnp.ones((nif,), jnp.float32)
    params["norm0_b"] = jnp.zeros((nif,), jnp.float32)

    nf = nif
    for bi, nl in enumerate(cfg["block_config"]):
        for li in range(nl):
            cin = nf + li * gr
            pref = f"block{bi}_layer{li}_"
            params[pref + "norm1_g"] = jnp.ones((cin,), jnp.float32)
            params[pref + "norm1_b"] = jnp.zeros((cin,), jnp.float32)
            params[pref + "conv1"] = conv_w(bs * gr, cin, 1, 1)
            params[pref + "norm2_g"] = jnp.ones((bs * gr,), jnp.float32)
            params[pref + "norm2_b"] = jnp.zeros((bs * gr,), jnp.float32)
            params[pref + "conv2"] = conv_w(gr, bs * gr, 3, 3)
        nf += nl * gr
        if bi != len(cfg["block_config"]) - 1:
            pref = f"trans{bi}_"
            params[pref + "norm_g"] = jnp.ones((nf,), jnp.float32)
            params[pref + "norm_b"] = jnp.zeros((nf,), jnp.float32)
            params[pref + "conv"] = conv_w(nf // 2, nf, 1, 1)
            nf //= 2

    params["norm5_g"] = jnp.ones((nf,), jnp.float32)
    params["norm5_b"] = jnp.zeros((nf,), jnp.float32)

    bound = 1.0 / (nf ** 0.5)  # torch Linear default weight init range
    params["fc_w"] = jax.random.uniform(
        next(keys), (cfg["num_classes"], nf), jnp.float32, -bound, bound)
    params["fc_b"] = jnp.zeros((cfg["num_classes"],), jnp.float32)
    return params


# ----------------------------------------------------------------------------
if __name__ == "__main__":
    cfg = dict(
        growth_rate=8,
        block_config=(2, 2),
        num_init_features=16,
        bn_size=2,
        drop_rate=0.0,
        num_classes=10,
    )

    key = jax.random.PRNGKey(0)
    kx, kp = jax.random.split(key)
    x = jax.random.normal(kx, (2, 3, 32, 32), jnp.float32)  # NCHW, like PyTorch
    params = init_params(kp, cfg)

    fwd = jax.jit(functools.partial(densenet_forward, cfg=cfg))
    out = jax.block_until_ready(fwd(x, params))

    assert out.shape == (2, cfg["num_classes"]), out.shape
    assert bool(jnp.all(jnp.isfinite(out)))
    print("KERNEL_OK")
</pallas_src>

<mosaic_0001>
module attributes {stable_mosaic.version = 11 : i64} {
  func.func @kernel(%arg0: i32, %arg1: i32, %arg2: memref<16x147xf32, #tpu.memory_space<vmem>>, %arg3: memref<147x256xf32, #tpu.memory_space<vmem>>, %arg4: memref<16x256xf32, #tpu.memory_space<vmem>>, %arg5: memref<16x256xf32, #tpu.memory_space<vmem>>) attributes {dimension_semantics = [#tpu.dimension_semantics<parallel>, #tpu.dimension_semantics<arbitrary>], iteration_bounds = array<i64: 2, 1>, scalar_prefetch = 0 : i64, scratch_operands = 1 : i64, tpu.core_type = #tpu.core_type<tc>, window_params = [{transform_indices = @transform_0, window_bounds = array<i64: 16, 147>}, {transform_indices = @transform_1, window_bounds = array<i64: 147, 256>}, {transform_indices = @transform_2, window_bounds = array<i64: 16, 256>}]} {
    %c0_i32 = arith.constant 0 : i32
    %0 = arith.cmpi eq, %arg1, %c0_i32 : i32
    %1 = arith.extui %0 : i1 to i32
    %c0_i32_0 = arith.constant 0 : i32
    %2 = arith.cmpi ne, %1, %c0_i32_0 : i32
    scf.if %2 {
      %cst_10 = arith.constant 0.000000e+00 : f32
      %12 = vector.broadcast %cst_10 : f32 to vector<16x256xf32>
      %c0_11 = arith.constant 0 : index
      %c0_12 = arith.constant 0 : index
      %13 = vector.load %arg5[%c0_11, %c0_12] : memref<16x256xf32, #tpu.memory_space<vmem>>, vector<16x256xf32>
      tpu.vector_store %arg5[%c0_11, %c0_12], %12 {strides = array<i32>} : memref<16x256xf32, #tpu.memory_space<vmem>>, vector<16x256xf32>,
    } else {
    }
    %c0 = arith.constant 0 : index
    %c0_1 = arith.constant 0 : index
    %3 = vector.load %arg3[%c0, %c0_1] : memref<147x256xf32, #tpu.memory_space<vmem>>, vector<147x256xf32>
    %c0_2 = arith.constant 0 : index
    %c0_3 = arith.constant 0 : index
    %4 = vector.load %arg5[%c0_2, %c0_3] : memref<16x256xf32, #tpu.memory_space<vmem>>, vector<16x256xf32>
    %c0_4 = arith.constant 0 : index
    %c0_5 = arith.constant 0 : index
    %5 = vector.load %arg2[%c0_4, %c0_5] : memref<16x147xf32, #tpu.memory_space<vmem>>, vector<16x147xf32>
    %cst = arith.constant dense<0.000000e+00> : vector<16x256xf32>
    %6 = tpu.matmul %5, %3, %cst {dimension_numbers = #tpu.dot_dimension_numbers<[1], [0], [0], [1], [0, 0, 1, 1], [], []>} : vector<16x147xf32>, vector<147x256xf32>, vector<16x256xf32> -> vector<16x256xf32>
    %7 = arith.addf %4, %6 : vector<16x256xf32>
    %c0_6 = arith.constant 0 : index
    %c0_7 = arith.constant 0 : index
    %8 = vector.load %arg5[%c0_6, %c0_7] : memref<16x256xf32, #tpu.memory_space<vmem>>, vector<16x256xf32>
    tpu.vector_store %arg5[%c0_6, %c0_7], %7 {strides = array<i32>} : memref<16x256xf32, #tpu.memory_space<vmem>>, vector<16x256xf32>,
    %c0_i32_8 = arith.constant 0 : i32
    %9 = arith.cmpi eq, %arg1, %c0_i32_8 : i32
    %10 = arith.extui %9 : i1 to i32
    %c0_i32_9 = arith.constant 0 : i32
    %11 = arith.cmpi ne, %10, %c0_i32_9 : i32
    scf.if %11 {
      %c0_10 = arith.constant 0 : index
      %c0_11 = arith.constant 0 : index
      %12 = vector.load %arg5[%c0_10, %c0_11] : memref<16x256xf32, #tpu.memory_space<vmem>>, vector<16x256xf32>
      %c0_12 = arith.constant 0 : index
      %c0_13 = arith.constant 0 : index
      %13 = vector.load %arg4[%c0_12, %c0_13] : memref<16x256xf32, #tpu.memory_space<vmem>>, vector<16x256xf32>
      tpu.vector_store %arg4[%c0_12, %c0_13], %12 {strides = array<i32>} : memref<16x256xf32, #tpu.memory_space<vmem>>, vector<16x256xf32>,
    } else {
    }
    return
  }
  func.func @transform_0(%arg0: i32, %arg1: i32) -> (i32, i32) {
    %c0_i32 = arith.constant 0 : i32
    %c0_i32_0 = arith.constant 0 : i32
    return %c0_i32, %arg1 : i32, i32
  }
  func.func @transform_1(%arg0: i32, %arg1: i32) -> (i32, i32) {
    %c0_i32 = arith.constant 0 : i32
    return %arg1, %arg0 : i32, i32
  }
  func.func @transform_2(%arg0: i32, %arg1: i32) -> (i32, i32) {
    %c0_i32 = arith.constant 0 : i32
    %c0_i32_0 = arith.constant 0 : i32
    return %c0_i32, %arg0 : i32, i32
  }
}

module attributes {stable_mosaic.version = 11 : i64} {
  func.func @kernel(%arg0: i32, %arg1: i32, %arg2: memref<16x16xf32, #tpu.memory_space<vmem>>, %arg3: memref<16x128xf32, #tpu.memory_space<vmem>>, %arg4: memref<16x1xf32, #tpu.memory_space<vmem>>, %arg5: memref<16x1xf32, #tpu.memory_space<vmem>>, %arg6: memref<16x128xf32, #tpu.memory_space<vmem>>, %arg7: memref<16x128xf32, #tpu.memory_space<vmem>>) attributes {dimension_semantics = [#tpu.dimension_semantics<parallel>, #tpu.dimension_semantics<arbitrary>], iteration_bounds = array<i64: 1, 1>, scalar_prefetch = 0 : i64, scratch_operands = 1 : i64, tpu.core_type = #tpu.core_type<tc>, window_params = [{transform_indices = @transform_0, window_bounds = array<i64: 16, 16>}, {transform_indices = @transform_1, window_bounds = array<i64: 16, 128>}, {transform_indices = @transform_2, window_bounds = array<i64: 16, 1>}, {transform_indices = @transform_3, window_bounds = array<i64: 16, 1>}, {transform_indices = @transform_4, window_bounds = array<i64: 16, 128>}]} {
    %c0_i32 = arith.constant 0 : i32
    %0 = arith.cmpi eq, %arg1, %c0_i32 : i32
    %1 = arith.extui %0 : i1 to i32
    %c0_i32_0 = arith.constant 0 : i32
    %2 = arith.cmpi ne, %1, %c0_i32_0 : i32
    scf.if %2 {
      %cst_15 = arith.constant 0.000000e+00 : f32
      %20 = vector.broadcast %cst_15 : f32 to vector<16x128xf32>
      %c0_16 = arith.constant 0 : index
      %c0_17 = arith.constant 0 : index
      %21 = vector.load %arg7[%c0_16, %c0_17] : memref<16x128xf32, #tpu.memory_space<vmem>>, vector<16x128xf32>
      tpu.vector_store %arg7[%c0_16, %c0_17], %20 {strides = array<i32>} : memref<16x128xf32, #tpu.memory_space<vmem>>, vector<16x128xf32>,
    } else {
    }
    %c0 = arith.constant 0 : index
    %c0_1 = arith.constant 0 : index
    %3 = vector.load %arg3[%c0, %c0_1] : memref<16x128xf32, #tpu.memory_space<vmem>>, vector<16x128xf32>
    %c0_2 = arith.constant 0 : index
    %c0_3 = arith.constant 0 : index
    %4 = vector.load %arg4[%c0_2, %c0_3] : memref<16x1xf32, #tpu.memory_space<vmem>>, vector<16x1xf32>
    %5 = vector.broadcast %4 : vector<16x1xf32> to vector<16x128xf32>
    %6 = arith.mulf %3, %5 : vector<16x128xf32>
    %c0_4 = arith.constant 0 : index
    %c0_5 = arith.constant 0 : index
    %7 = vector.load %arg5[%c0_4, %c0_5] : memref<16x1xf32, #tpu.memory_space<vmem>>, vector<16x1xf32>
    %8 = vector.broadcast %7 : vector<16x1xf32> to vector<16x128xf32>
    %9 = arith.addf %6, %8 : vector<16x128xf32>
    %cst = arith.constant 0.000000e+00 : f32
    %10 = vector.broadcast %cst : f32 to vector<16x128xf32>
    %11 = arith.maximumf %9, %10 : vector<16x128xf32>
    %c0_6 = arith.constant 0 : index
    %c0_7 = arith.constant 0 : index
    %12 = vector.load %arg7[%c0_6, %c0_7] : memref<16x128xf32, #tpu.memory_space<vmem>>, vector<16x128xf32>
    %c0_8 = arith.constant 0 : index
    %c0_9 = arith.constant 0 : index
    %13 = vector.load %arg2[%c0_8, %c0_9] : memref<16x16xf32, #tpu.memory_space<vmem>>, vector<16x16xf32>
    %cst_10 = arith.constant dense<0.000000e+00> : vector<16x128xf32>
    %14 = tpu.matmul %13, %11, %cst_10 {dimension_numbers = #tpu.dot_dimension_numbers<[1], [0], [0], [1], [0, 0, 1, 1], [], []>} : vector<16x16xf32>, vector<16x128xf32>, vector<16x128xf32> -> vector<16x128xf32>
    %15 = arith.addf %12, %14 : vector<16x128xf32>
    %c0_11 = arith.constant 0 : index
    %c0_12 = arith.constant 0 : index
    %16 = vector.load %arg7[%c0_11, %c0_12] : memref<16x128xf32, #tpu.memory_space<vmem>>, vector<16x128xf32>
    tpu.vector_store %arg7[%c0_11, %c0_12], %15 {strides = array<i32>} : memref<16x128xf32, #tpu.memory_space<vmem>>, vector<16x128xf32>,
    %c0_i32_13 = arith.constant 0 : i32
    %17 = arith.cmpi eq, %arg1, %c0_i32_13 : i32
    %18 = arith.extui %17 : i1 to i32
    %c0_i32_14 = arith.constant 0 : i32
    %19 = arith.cmpi ne, %18, %c0_i32_14 : i32
    scf.if %19 {
      %c0_15 = arith.constant 0 : index
      %c0_16 = arith.constant 0 : index
      %20 = vector.load %arg7[%c0_15, %c0_16] : memref<16x128xf32, #tpu.memory_space<vmem>>, vector<16x128xf32>
      %c0_17 = arith.constant 0 : index
      %c0_18 = arith.constant 0 : index
      %21 = vector.load %arg6[%c0_17, %c0_18] : memref<16x128xf32, #tpu.memory_space<vmem>>, vector<16x128xf32>
      tpu.vector_store %arg6[%c0_17, %c0_18], %20 {strides = array<i32>} : memref<16x128xf32, #tpu.memory_space<vmem>>, vector<16x128xf32>,
    } else {
    }
    return
  }
  func.func @transform_0(%arg0: i32, %arg1: i32) -> (i32, i32) {
    %c0_i32 = arith.constant 0 : i32
    %c0_i32_0 = arith.constant 0 : i32
    return %c0_i32, %arg1 : i32, i32
  }
  func.func @transform_1(%arg0: i32, %arg1: i32) -> (i32, i32) {
    %c0_i32 = arith.constant 0 : i32
    return %arg1, %arg0 : i32, i32
  }
  func.func @transform_2(%arg0: i32, %arg1: i32) -> (i32, i32) {
    %c0_i32 = arith.constant 0 : i32
    %c0_i32_0 = arith.constant 0 : i32
    return %arg1, %c0_i32 : i32, i32
  }
  func.func @transform_3(%arg0: i32, %arg1: i32) -> (i32, i32) {
    %c0_i32 = arith.constant 0 : i32
    %c0_i32_0 = arith.constant 0 : i32
    return %arg1, %c0_i32 : i32, i32
  }
  func.func @transform_4(%arg0: i32, %arg1: i32) -> (i32, i32) {
    %c0_i32 = arith.constant 0 : i32
    %c0_i32_0 = arith.constant 0 : i32
    return %c0_i32, %arg0 : i32, i32
  }
}

module attributes {stable_mosaic.version = 11 : i64} {
  func.func @kernel(%arg0: i32, %arg1: memref<9x16x128xf32, #tpu.memory_space<vmem>>, %arg2: memref<16x1xf32, #tpu.memory_space<vmem>>, %arg3: memref<16x1xf32, #tpu.memory_space<vmem>>, %arg4: memref<16x128xf32, #tpu.memory_space<vmem>>) attributes {dimension_semantics = [#tpu.dimension_semantics<parallel>], iteration_bounds = array<i64: 1>, scalar_prefetch = 0 : i64, scratch_operands = 0 : i64, tpu.core_type = #tpu.core_type<tc>, window_params = [{transform_indices = @transform_0, window_bounds = array<i64: 9, 16, 128>}, {pipeline_mode = #tpu.pipeline_mode<synchronous>, transform_indices = @transform_1, window_bounds = array<i64: 16, 1>}, {pipeline_mode = #tpu.pipeline_mode<synchronous>, transform_indices = @transform_2, window_bounds = array<i64: 16, 1>}, {transform_indices = @transform_3, window_bounds = array<i64: 16, 128>}]} {
    %c0 = arith.constant 0 : index
    %c0_0 = arith.constant 0 : index
    %0 = vector.load %arg2[%c0, %c0_0] : memref<16x1xf32, #tpu.memory_space<vmem>>, vector<16x1xf32>
    %c0_1 = arith.constant 0 : index
    %c0_2 = arith.constant 0 : index
    %1 = vector.load %arg3[%c0_1, %c0_2] : memref<16x1xf32, #tpu.memory_space<vmem>>, vector<16x1xf32>
    %c0_3 = arith.constant 0 : index
    %c0_4 = arith.constant 0 : index
    %c0_5 = arith.constant 0 : index
    %2 = vector.load %arg1[%c0_3, %c0_4, %c0_5] : memref<9x16x128xf32, #tpu.memory_space<vmem>>, vector<1x16x128xf32>
    %3 = vector.shape_cast %2 : vector<1x16x128xf32> to vector<16x128xf32>
    %4 = vector.broadcast %0 : vector<16x1xf32> to vector<16x128xf32>
    %5 = arith.mulf %3, %4 : vector<16x128xf32>
    %6 = vector.broadcast %1 : vector<16x1xf32> to vector<16x128xf32>
    %7 = arith.addf %5, %6 : vector<16x128xf32>
    %cst = arith.constant 0.000000e+00 : f32
    %8 = vector.broadcast %cst : f32 to vector<16x128xf32>
    %9 = arith.maximumf %7, %8 : vector<16x128xf32>
    %c1 = arith.constant 1 : index
    %c0_6 = arith.constant 0 : index
    %c0_7 = arith.constant 0 : index
    %10 = vector.load %arg1[%c1, %c0_6, %c0_7] : memref<9x16x128xf32, #tpu.memory_space<vmem>>, vector<1x16x128xf32>
    %11 = vector.shape_cast %10 : vector<1x16x128xf32> to vector<16x128xf32>
    %12 = vector.broadcast %0 : vector<16x1xf32> to vector<16x128xf32>
    %13 = arith.mulf %11, %12 : vector<16x128xf32>
    %14 = vector.broadcast %1 : vector<16x1xf32> to vector<16x128xf32>
    %15 = arith.addf %13, %14 : vector<16x128xf32>
    %cst_8 = arith.constant 0.000000e+00 : f32
    %16 = vector.broadcast %cst_8 : f32 to vector<16x128xf32>
    %17 = arith.maximumf %15, %16 : vector<16x128xf32>
    %18 = arith.maximumf %9, %17 : vector<16x128xf32>
    %c2 = arith.constant 2 : index
    %c0_9 = arith.constant 0 : index
    %c0_10 = arith.constant 0 : index
    %19 = vector.load %arg1[%c2, %c0_9, %c0_10] : memref<9x16x128xf32, #tpu.memory_space<vmem>>, vector<1x16x128xf32>
    %20 = vector.shape_cast %19 : vector<1x16x128xf32> to vector<16x128xf32>
    %21 = vector.broadcast %0 : vector<16x1xf32> to vector<16x128xf32>
    %22 = arith.mulf %20, %21 : vector<16x128xf32>
    %23 = vector.broadcast %1 : vector<16x1xf32> to vector<16x128xf32>
    %24 = arith.addf %22, %23 : vector<16x128xf32>
    %cst_11 = arith.constant 0.000000e+00 : f32
    %25 = vector.broadcast %cst_11 : f32 to vector<16x128xf32>
    %26 = arith.maximumf %24, %25 : vector<16x128xf32>
    %27 = arith.maximumf %18, %26 : vector<16x128xf32>
    %c3 = arith.constant 3 : index
    %c0_12 = arith.constant 0 : index
    %c0_13 = arith.constant 0 : index
    %28 = vector.load %arg1[%c3, %c0_12, %c0_13] : memref<9x16x128xf32, #tpu.memory_space<vmem>>, vector<1x16x128xf32>
    %29 = vector.shape_cast %28 : vector<1x16x128xf32> to vector<16x128xf32>
    %30 = vector.broadcast %0 : vector<16x1xf32> to vector<16x128xf32>
    %31 = arith.mulf %29, %30 : vector<16x128xf32>
    %32 = vector.broadcast %1 : vector<16x1xf32> to vector<16x128xf32>
    %33 = arith.addf %31, %32 : vector<16x128xf32>
    %cst_14 = arith.constant 0.000000e+00 : f32
    %34 = vector.broadcast %cst_14 : f32 to vector<16x128xf32>
    %35 = arith.maximumf %33, %34 : vector<16x128xf32>
    %36 = arith.maximumf %27, %35 : vector<16x128xf32>
    %c4 = arith.constant 4 : index
    %c0_15 = arith.constant 0 : index
    %c0_16 = arith.constant 0 : index
    %37 = vector.load %arg1[%c4, %c0_15, %c0_16] : memref<9x16x128xf32, #tpu.memory_space<vmem>>, vector<1x16x128xf32>
    %38 = vector.shape_cast %37 : vector<1x16x128xf32> to vector<16x128xf32>
    %39 = vector.broadcast %0 : vector<16x1xf32> to vector<16x128xf32>
    %40 = arith.mulf %38, %39 : vector<16x128xf32>
    %41 = vector.broadcast %1 : vector<16x1xf32> to vector<16x128xf32>
    %42 = arith.addf %40, %41 : vector<16x128xf32>
    %cst_17 = arith.constant 0.000000e+00 : f32
    %43 = vector.broadcast %cst_17 : f32 to vector<16x128xf32>
    %44 = arith.maximumf %42, %43 : vector<16x128xf32>
    %45 = arith.maximumf %36, %44 : vector<16x128xf32>
    %c5 = arith.constant 5 : index
    %c0_18 = arith.constant 0 : index
    %c0_19 = arith.constant 0 : index
    %46 = vector.load %arg1[%c5, %c0_18, %c0_19] : memref<9x16x128xf32, #tpu.memory_space<vmem>>, vector<1x16x128xf32>
    %47 = vector.shape_cast %46 : vector<1x16x128xf32> to vector<16x128xf32>
    %48 = vector.broadcast %0 : vector<16x1xf32> to vector<16x128xf32>
    %49 = arith.mulf %47, %48 : vector<16x128xf32>
    %50 = vector.broadcast %1 : vector<16x1xf32> to vector<16x128xf32>
    %51 = arith.addf %49, %50 : vector<16x128xf32>
    %cst_20 = arith.constant 0.000000e+00 : f32
    %52 = vector.broadcast %cst_20 : f32 to vector<16x128xf32>
    %53 = arith.maximumf %51, %52 : vector<16x128xf32>
    %54 = arith.maximumf %45, %53 : vector<16x128xf32>
    %c6 = arith.constant 6 : index
    %c0_21 = arith.constant 0 : index
    %c0_22 = arith.constant 0 : index
    %55 = vector.load %arg1[%c6, %c0_21, %c0_22] : memref<9x16x128xf32, #tpu.memory_space<vmem>>, vector<1x16x128xf32>
    %56 = vector.shape_cast %55 : vector<1x16x128xf32> to vector<16x128xf32>
    %57 = vector.broadcast %0 : vector<16x1xf32> to vector<16x128xf32>
    %58 = arith.mulf %56, %57 : vector<16x128xf32>
    %59 = vector.broadcast %1 : vector<16x1xf32> to vector<16x128xf32>
    %60 = arith.addf %58, %59 : vector<16x128xf32>
    %cst_23 = arith.constant 0.000000e+00 : f32
    %61 = vector.broadcast %cst_23 : f32 to vector<16x128xf32>
    %62 = arith.maximumf %60, %61 : vector<16x128xf32>
    %63 = arith.maximumf %54, %62 : vector<16x128xf32>
    %c7 = arith.constant 7 : index
    %c0_24 = arith.constant 0 : index
    %c0_25 = arith.constant 0 : index
    %64 = vector.load %arg1[%c7, %c0_24, %c0_25] : memref<9x16x128xf32, #tpu.memory_space<vmem>>, vector<1x16x128xf32>
    %65 = vector.shape_cast %64 : vector<1x16x128xf32> to vector<16x128xf32>
    %66 = vector.broadcast %0 : vector<16x1xf32> to vector<16x128xf32>
    %67 = arith.mulf %65, %66 : vector<16x128xf32>
    %68 = vector.broadcast %1 : vector<16x1xf32> to vector<16x128xf32>
    %69 = arith.addf %67, %68 : vector<16x128xf32>
    %cst_26 = arith.constant 0.000000e+00 : f32
    %70 = vector.broadcast %cst_26 : f32 to vector<16x128xf32>
    %71 = arith.maximumf %69, %70 : vector<16x128xf32>
    %72 = arith.maximumf %63, %71 : vector<16x128xf32>
    %c8 = arith.constant 8 : index
    %c0_27 = arith.constant 0 : index
    %c0_28 = arith.constant 0 : index
    %73 = vector.load %arg1[%c8, %c0_27, %c0_28] : memref<9x16x128xf32, #tpu.memory_space<vmem>>, vector<1x16x128xf32>
    %74 = vector.shape_cast %73 : vector<1x16x128xf32> to vector<16x128xf32>
    %75 = vector.broadcast %0 : vector<16x1xf32> to vector<16x128xf32>
    %76 = arith.mulf %74, %75 : vector<16x128xf32>
    %77 = vector.broadcast %1 : vector<16x1xf32> to vector<16x128xf32>
    %78 = arith.addf %76, %77 : vector<16x128xf32>
    %cst_29 = arith.constant 0.000000e+00 : f32
    %79 = vector.broadcast %cst_29 : f32 to vector<16x128xf32>
    %80 = arith.maximumf %78, %79 : vector<16x128xf32>
    %81 = arith.maximumf %72, %80 : vector<16x128xf32>
    %c0_30 = arith.constant 0 : index
    %c0_31 = arith.constant 0 : index
    %82 = vector.load %arg4[%c0_30, %c0_31] : memref<16x128xf32, #tpu.memory_space<vmem>>, vector<16x128xf32>
    tpu.vector_store %arg4[%c0_30, %c0_31], %81 {strides = array<i32>} : memref<16x128xf32, #tpu.memory_space<vmem>>, vector<16x128xf32>,
    return
  }
  func.func @transform_0(%arg0: i32) -> (i32, i32, i32) {
    %c0_i32 = arith.constant 0 : i32
    %c0_i32_0 = arith.constant 0 : i32
    %c0_i32_1 = arith.constant 0 : i32
    return %c0_i32, %c0_i32_0, %arg0 : i32, i32, i32
  }
  func.func @transform_1(%arg0: i32) -> (i32, i32) {
    %c0_i32 = arith.constant 0 : i32
    %c0_i32_0 = arith.constant 0 : i32
    %c0_i32_1 = arith.constant 0 : i32
    return %c0_i32, %c0_i32_0 : i32, i32
  }
  func.func @transform_2(%arg0: i32) -> (i32, i32) {
    %c0_i32 = arith.constant 0 : i32
    %c0_i32_0 = arith.constant 0 : i32
    %c0_i32_1 = arith.constant 0 : i32
    return %c0_i32, %c0_i32_0 : i32, i32
  }
  func.func @transform_3(%arg0: i32) -> (i32, i32) {
    %c0_i32 = arith.constant 0 : i32
    %c0_i32_0 = arith.constant 0 : i32
    return %c0_i32, %arg0 : i32, i32
  }
}

module attributes {stable_mosaic.version = 11 : i64} {
  func.func @kernel(%arg0: i32, %arg1: i32, %arg2: memref<8x144xf32, #tpu.memory_space<vmem>>, %arg3: memref<144x128xf32, #tpu.memory_space<vmem>>, %arg4: memref<144x1xf32, #tpu.memory_space<vmem>>, %arg5: memref<144x1xf32, #tpu.memory_space<vmem>>, %arg6: memref<8x128xf32, #tpu.memory_space<vmem>>, %arg7: memref<8x128xf32, #tpu.memory_space<vmem>>) attributes {dimension_semantics = [#tpu.dimension_semantics<parallel>, #tpu.dimension_semantics<arbitrary>], iteration_bounds = array<i64: 1, 1>, scalar_prefetch = 0 : i64, scratch_operands = 1 : i64, tpu.core_type = #tpu.core_type<tc>, window_params = [{transform_indices = @transform_0, window_bounds = array<i64: 8, 144>}, {transform_indices = @transform_1, window_bounds = array<i64: 144, 128>}, {transform_indices = @transform_2, window_bounds = array<i64: 144, 1>}, {transform_indices = @transform_3, window_bounds = array<i64: 144, 1>}, {transform_indices = @transform_4, window_bounds = array<i64: 8, 128>}]} {
    %c0_i32 = arith.constant 0 : i32
    %0 = arith.cmpi eq, %arg1, %c0_i32 : i32
    %1 = arith.extui %0 : i1 to i32
    %c0_i32_0 = arith.constant 0 : i32
    %2 = arith.cmpi ne, %1, %c0_i32_0 : i32
    scf.if %2 {
      %cst_15 = arith.constant 0.000000e+00 : f32
      %20 = vector.broadcast %cst_15 : f32 to vector<8x128xf32>
      %c0_16 = arith.constant 0 : index
      %c0_17 = arith.constant 0 : index
      %21 = vector.load %arg7[%c0_16, %c0_17] : memref<8x128xf32, #tpu.memory_space<vmem>>, vector<8x128xf32>
      tpu.vector_store %arg7[%c0_16, %c0_17], %20 {strides = array<i32>} : memref<8x128xf32, #tpu.memory_space<vmem>>, vector<8x128xf32>,
    } else {
    }
    %c0 = arith.constant 0 : index
    %c0_1 = arith.constant 0 : index
    %3 = vector.load %arg3[%c0, %c0_1] : memref<144x128xf32, #tpu.memory_space<vmem>>, vector<144x128xf32>
    %c0_2 = arith.constant 0 : index
    %c0_3 = arith.constant 0 : index
    %4 = vector.load %arg4[%c0_2, %c0_3] : memref<144x1xf32, #tpu.memory_space<vmem>>, vector<144x1xf32>
    %5 = vector.broadcast %4 : vector<144x1xf32> to vector<144x128xf32>
    %6 = arith.mulf %3, %5 : vector<144x128xf32>
    %c0_4 = arith.constant 0 : index
    %c0_5 = arith.constant 0 : index
    %7 = vector.load %arg5[%c0_4, %c0_5] : memref<144x1xf32, #tpu.memory_space<vmem>>, vector<144x1xf32>
    %8 = vector.broadcast %7 : vector<144x1xf32> to vector<144x128xf32>
    %9 = arith.addf %6, %8 : vector<144x128xf32>
    %cst = arith.constant 0.000000e+00 : f32
    %10 = vector.broadcast %cst : f32 to vector<144x128xf32>
    %11 = arith.maximumf %9, %10 : vector<144x128xf32>
    %c0_6 = arith.constant 0 : index
    %c0_7 = arith.constant 0 : index
    %12 = vector.load %arg7[%c0_6, %c0_7] : memref<8x128xf32, #tpu.memory_space<vmem>>, vector<8x128xf32>
    %c0_8 = arith.constant 0 : index
    %c0_9 = arith.constant 0 : index
    %13 = vector.load %arg2[%c0_8, %c0_9] : memref<8x144xf32, #tpu.memory_space<vmem>>, vector<8x144xf32>
    %cst_10 = arith.constant dense<0.000000e+00> : vector<8x128xf32>
    %14 = tpu.matmul %13, %11, %cst_10 {dimension_numbers = #tpu.dot_dimension_numbers<[1], [0], [0], [1], [0, 0, 1, 1], [], []>} : vector<8x144xf32>, vector<144x128xf32>, vector<8x128xf32> -> vector<8x128xf32>
    %15 = arith.addf %12, %14 : vector<8x128xf32>
    %c0_11 = arith.constant 0 : index
    %c0_12 = arith.constant 0 : index
    %16 = vector.load %arg7[%c0_11, %c0_12] : memref<8x128xf32, #tpu.memory_space<vmem>>, vector<8x128xf32>
    tpu.vector_store %arg7[%c0_11, %c0_12], %15 {strides = array<i32>} : memref<8x128xf32, #tpu.memory_space<vmem>>, vector<8x128xf32>,
    %c0_i32_13 = arith.constant 0 : i32
    %17 = arith.cmpi eq, %arg1, %c0_i32_13 : i32
    %18 = arith.extui %17 : i1 to i32
    %c0_i32_14 = arith.constant 0 : i32
    %19 = arith.cmpi ne, %18, %c0_i32_14 : i32
    scf.if %19 {
      %c0_15 = arith.constant 0 : index
      %c0_16 = arith.constant 0 : index
      %20 = vector.load %arg7[%c0_15, %c0_16] : memref<8x128xf32, #tpu.memory_space<vmem>>, vector<8x128xf32>
      %c0_17 = arith.constant 0 : index
      %c0_18 = arith.constant 0 : index
      %21 = vector.load %arg6[%c0_17, %c0_18] : memref<8x128xf32, #tpu.memory_space<vmem>>, vector<8x128xf32>
      tpu.vector_store %arg6[%c0_17, %c0_18], %20 {strides = array<i32>} : memref<8x128xf32, #tpu.memory_space<vmem>>, vector<8x128xf32>,
    } else {
    }
    return
  }
  func.func @transform_0(%arg0: i32, %arg1: i32) -> (i32, i32) {
    %c0_i32 = arith.constant 0 : i32
    %c0_i32_0 = arith.constant 0 : i32
    return %c0_i32, %arg1 : i32, i32
  }
  func.func @transform_1(%arg0: i32, %arg1: i32) -> (i32, i32) {
    %c0_i32 = arith.constant 0 : i32
    return %arg1, %arg0 : i32, i32
  }
  func.func @transform_2(%arg0: i32, %arg1: i32) -> (i32, i32) {
    %c0_i32 = arith.constant 0 : i32
    %c0_i32_0 = arith.constant 0 : i32
    return %arg1, %c0_i32 : i32, i32
  }
  func.func @transform_3(%arg0: i32, %arg1: i32) -> (i32, i32) {
    %c0_i32 = arith.constant 0 : i32
    %c0_i32_0 = arith.constant 0 : i32
    return %arg1, %c0_i32 : i32, i32
  }
  func.func @transform_4(%arg0: i32, %arg1: i32) -> (i32, i32) {
    %c0_i32 = arith.constant 0 : i32
    %c0_i32_0 = arith.constant 0 : i32
    return %c0_i32, %arg0 : i32, i32
  }
}

module attributes {stable_mosaic.version = 11 : i64} {
  func.func @kernel(%arg0: i32, %arg1: i32, %arg2: memref<16x24xf32, #tpu.memory_space<vmem>>, %arg3: memref<24x128xf32, #tpu.memory_space<vmem>>, %arg4: memref<24x1xf32, #tpu.memory_space<vmem>>, %arg5: memref<24x1xf32, #tpu.memory_space<vmem>>, %arg6: memref<16x128xf32, #tpu.memory_space<vmem>>, %arg7: memref<16x128xf32, #tpu.memory_space<vmem>>) attributes {dimension_semantics = [#tpu.dimension_semantics<parallel>, #tpu.dimension_semantics<arbitrary>], iteration_bounds = array<i64: 1, 1>, scalar_prefetch = 0 : i64, scratch_operands = 1 : i64, tpu.core_type = #tpu.core_type<tc>, window_params = [{transform_indices = @transform_0, window_bounds = array<i64: 16, 24>}, {transform_indices = @transform_1, window_bounds = array<i64: 24, 128>}, {transform_indices = @transform_2, window_bounds = array<i64: 24, 1>}, {transform_indices = @transform_3, window_bounds = array<i64: 24, 1>}, {transform_indices = @transform_4, window_bounds = array<i64: 16, 128>}]} {
    %c0_i32 = arith.constant 0 : i32
    %0 = arith.cmpi eq, %arg1, %c0_i32 : i32
    %1 = arith.extui %0 : i1 to i32
    %c0_i32_0 = arith.constant 0 : i32
    %2 = arith.cmpi ne, %1, %c0_i32_0 : i32
    scf.if %2 {
      %cst_15 = arith.constant 0.000000e+00 : f32
      %20 = vector.broadcast %cst_15 : f32 to vector<16x128xf32>
      %c0_16 = arith.constant 0 : index
      %c0_17 = arith.constant 0 : index
      %21 = vector.load %arg7[%c0_16, %c0_17] : memref<16x128xf32, #tpu.memory_space<vmem>>, vector<16x128xf32>
      tpu.vector_store %arg7[%c0_16, %c0_17], %20 {strides = array<i32>} : memref<16x128xf32, #tpu.memory_space<vmem>>, vector<16x128xf32>,
    } else {
    }
    %c0 = arith.constant 0 : index
    %c0_1 = arith.constant 0 : index
    %3 = vector.load %arg3[%c0, %c0_1] : memref<24x128xf32, #tpu.memory_space<vmem>>, vector<24x128xf32>
    %c0_2 = arith.constant 0 : index
    %c0_3 = arith.constant 0 : index
    %4 = vector.load %arg4[%c0_2, %c0_3] : memref<24x1xf32, #tpu.memory_space<vmem>>, vector<24x1xf32>
    %5 = vector.broadcast %4 : vector<24x1xf32> to vector<24x128xf32>
    %6 = arith.mulf %3, %5 : vector<24x128xf32>
    %c0_4 = arith.constant 0 : index
    %c0_5 = arith.constant 0 : index
    %7 = vector.load %arg5[%c0_4, %c0_5] : memref<24x1xf32, #tpu.memory_space<vmem>>, vector<24x1xf32>
    %8 = vector.broadcast %7 : vector<24x1xf32> to vector<24x128xf32>
    %9 = arith.addf %6, %8 : vector<24x128xf32>
    %cst = arith.constant 0.000000e+00 : f32
    %10 = vector.broadcast %cst : f32 to vector<24x128xf32>
    %11 = arith.maximumf %9, %10 : vector<24x128xf32>
    %c0_6 = arith.constant 0 : index
    %c0_7 = arith.constant 0 : index
    %12 = vector.load %arg7[%c0_6, %c0_7] : memref<16x128xf32, #tpu.memory_space<vmem>>, vector<16x128xf32>
    %c0_8 = arith.constant 0 : index
    %c0_9 = arith.constant 0 : index
    %13 = vector.load %arg2[%c0_8, %c0_9] : memref<16x24xf32, #tpu.memory_space<vmem>>, vector<16x24xf32>
    %cst_10 = arith.constant dense<0.000000e+00> : vector<16x128xf32>
    %14 = tpu.matmul %13, %11, %cst_10 {dimension_numbers = #tpu.dot_dimension_numbers<[1], [0], [0], [1], [0, 0, 1, 1], [], []>} : vector<16x24xf32>, vector<24x128xf32>, vector<16x128xf32> -> vector<16x128xf32>
    %15 = arith.addf %12, %14 : vector<16x128xf32>
    %c0_11 = arith.constant 0 : index
    %c0_12 = arith.constant 0 : index
    %16 = vector.load %arg7[%c0_11, %c0_12] : memref<16x128xf32, #tpu.memory_space<vmem>>, vector<16x128xf32>
    tpu.vector_store %arg7[%c0_11, %c0_12], %15 {strides = array<i32>} : memref<16x128xf32, #tpu.memory_space<vmem>>, vector<16x128xf32>,
    %c0_i32_13 = arith.constant 0 : i32
    %17 = arith.cmpi eq, %arg1, %c0_i32_13 : i32
    %18 = arith.extui %17 : i1 to i32
    %c0_i32_14 = arith.constant 0 : i32
    %19 = arith.cmpi ne, %18, %c0_i32_14 : i32
    scf.if %19 {
      %c0_15 = arith.constant 0 : index
      %c0_16 = arith.constant 0 : index
      %20 = vector.load %arg7[%c0_15, %c0_16] : memref<16x128xf32, #tpu.memory_space<vmem>>, vector<16x128xf32>
      %c0_17 = arith.constant 0 : index
      %c0_18 = arith.constant 0 : index
      %21 = vector.load %arg6[%c0_17, %c0_18] : memref<16x128xf32, #tpu.memory_space<vmem>>, vector<16x128xf32>
      tpu.vector_store %arg6[%c0_17, %c0_18], %20 {strides = array<i32>} : memref<16x128xf32, #tpu.memory_space<vmem>>, vector<16x128xf32>,
    } else {
    }
    return
  }
  func.func @transform_0(%arg0: i32, %arg1: i32) -> (i32, i32) {
    %c0_i32 = arith.constant 0 : i32
    %c0_i32_0 = arith.constant 0 : i32
    return %c0_i32, %arg1 : i32, i32
  }
  func.func @transform_1(%arg0: i32, %arg1: i32) -> (i32, i32) {
    %c0_i32 = arith.constant 0 : i32
    return %arg1, %arg0 : i32, i32
  }
  func.func @transform_2(%arg0: i32, %arg1: i32) -> (i32, i32) {
    %c0_i32 = arith.constant 0 : i32
    %c0_i32_0 = arith.constant 0 : i32
    return %arg1, %c0_i32 : i32, i32
  }
  func.func @transform_3(%arg0: i32, %arg1: i32) -> (i32, i32) {
    %c0_i32 = arith.constant 0 : i32
    %c0_i32_0 = arith.constant 0 : i32
    return %arg1, %c0_i32 : i32, i32
  }
  func.func @transform_4(%arg0: i32, %arg1: i32) -> (i32, i32) {
    %c0_i32 = arith.constant 0 : i32
    %c0_i32_0 = arith.constant 0 : i32
    return %c0_i32, %arg0 : i32, i32
  }
}

module attributes {stable_mosaic.version = 11 : i64} {
  func.func @kernel(%arg0: i32, %arg1: i32, %arg2: memref<16x32xf32, #tpu.memory_space<vmem>>, %arg3: memref<32x128xf32, #tpu.memory_space<vmem>>, %arg4: memref<16x128xf32, #tpu.memory_space<vmem>>, %arg5: memref<16x128xf32, #tpu.memory_space<vmem>>) attributes {dimension_semantics = [#tpu.dimension_semantics<parallel>, #tpu.dimension_semantics<arbitrary>], iteration_bounds = array<i64: 1, 1>, scalar_prefetch = 0 : i64, scratch_operands = 1 : i64, tpu.core_type = #tpu.core_type<tc>, window_params = [{transform_indices = @transform_0, window_bounds = array<i64: 16, 32>}, {transform_indices = @transform_1, window_bounds = array<i64: 32, 128>}, {transform_indices = @transform_2, window_bounds = array<i64: 16, 128>}]} {
    %c0_i32 = arith.constant 0 : i32
    %0 = arith.cmpi eq, %arg1, %c0_i32 : i32
    %1 = arith.extui %0 : i1 to i32
    %c0_i32_0 = arith.constant 0 : i32
    %2 = arith.cmpi ne, %1, %c0_i32_0 : i32
    scf.if %2 {
      %cst_10 = arith.constant 0.000000e+00 : f32
      %12 = vector.broadcast %cst_10 : f32 to vector<16x128xf32>
      %c0_11 = arith.constant 0 : index
      %c0_12 = arith.constant 0 : index
      %13 = vector.load %arg5[%c0_11, %c0_12] : memref<16x128xf32, #tpu.memory_space<vmem>>, vector<16x128xf32>
      tpu.vector_store %arg5[%c0_11, %c0_12], %12 {strides = array<i32>} : memref<16x128xf32, #tpu.memory_space<vmem>>, vector<16x128xf32>,
    } else {
    }
    %c0 = arith.constant 0 : index
    %c0_1 = arith.constant 0 : index
    %3 = vector.load %arg3[%c0, %c0_1] : memref<32x128xf32, #tpu.memory_space<vmem>>, vector<32x128xf32>
    %c0_2 = arith.constant 0 : index
    %c0_3 = arith.constant 0 : index
    %4 = vector.load %arg5[%c0_2, %c0_3] : memref<16x128xf32, #tpu.memory_space<vmem>>, vector<16x128xf32>
    %c0_4 = arith.constant 0 : index
    %c0_5 = arith.constant 0 : index
    %5 = vector.load %arg2[%c0_4, %c0_5] : memref<16x32xf32, #tpu.memory_space<vmem>>, vector<16x32xf32>
    %cst = arith.constant dense<0.000000e+00> : vector<16x128xf32>
    %6 = tpu.matmul %5, %3, %cst {dimension_numbers = #tpu.dot_dimension_numbers<[1], [0], [0], [1], [0, 0, 1, 1], [], []>} : vector<16x32xf32>, vector<32x128xf32>, vector<16x128xf32> -> vector<16x128xf32>
    %7 = arith.addf %4, %6 : vector<16x128xf32>
    %c0_6 = arith.constant 0 : index
    %c0_7 = arith.constant 0 : index
    %8 = vector.load %arg5[%c0_6, %c0_7] : memref<16x128xf32, #tpu.memory_space<vmem>>, vector<16x128xf32>
    tpu.vector_store %arg5[%c0_6, %c0_7], %7 {strides = array<i32>} : memref<16x128xf32, #tpu.memory_space<vmem>>, vector<16x128xf32>,
    %c0_i32_8 = arith.constant 0 : i32
    %9 = arith.cmpi eq, %arg1, %c0_i32_8 : i32
    %10 = arith.extui %9 : i1 to i32
    %c0_i32_9 = arith.constant 0 : i32
    %11 = arith.cmpi ne, %10, %c0_i32_9 : i32
    scf.if %11 {
      %c0_10 = arith.constant 0 : index
      %c0_11 = arith.constant 0 : index
      %12 = vector.load %arg5[%c0_10, %c0_11] : memref<16x128xf32, #tpu.memory_space<vmem>>, vector<16x128xf32>
      %c0_12 = arith.constant 0 : index
      %c0_13 = arith.constant 0 : index
      %13 = vector.load %arg4[%c0_12, %c0_13] : memref<16x128xf32, #tpu.memory_space<vmem>>, vector<16x128xf32>
      tpu.vector_store %arg4[%c0_12, %c0_13], %12 {strides = array<i32>} : memref<16x128xf32, #tpu.memory_space<vmem>>, vector<16x128xf32>,
    } else {
    }
    return
  }
  func.func @transform_0(%arg0: i32, %arg1: i32) -> (i32, i32) {
    %c0_i32 = arith.constant 0 : i32
    %c0_i32_0 = arith.constant 0 : i32
    return %c0_i32, %arg1 : i32, i32
  }
  func.func @transform_1(%arg0: i32, %arg1: i32) -> (i32, i32) {
    %c0_i32 = arith.constant 0 : i32
    return %arg1, %arg0 : i32, i32
  }
  func.func @transform_2(%arg0: i32, %arg1: i32) -> (i32, i32) {
    %c0_i32 = arith.constant 0 : i32
    %c0_i32_0 = arith.constant 0 : i32
    return %c0_i32, %arg0 : i32, i32
  }
}

module attributes {stable_mosaic.version = 11 : i64} {
  func.func @kernel(%arg0: i32, %arg1: memref<4x32x128xf32, #tpu.memory_space<vmem>>, %arg2: memref<32x1xf32, #tpu.memory_space<vmem>>, %arg3: memref<32x1xf32, #tpu.memory_space<vmem>>, %arg4: memref<32x128xf32, #tpu.memory_space<vmem>>) attributes {dimension_semantics = [#tpu.dimension_semantics<parallel>], iteration_bounds = array<i64: 1>, scalar_prefetch = 0 : i64, scratch_operands = 0 : i64, tpu.core_type = #tpu.core_type<tc>, window_params = [{transform_indices = @transform_0, window_bounds = array<i64: 4, 32, 128>}, {pipeline_mode = #tpu.pipeline_mode<synchronous>, transform_indices = @transform_1, window_bounds = array<i64: 32, 1>}, {pipeline_mode = #tpu.pipeline_mode<synchronous>, transform_indices = @transform_2, window_bounds = array<i64: 32, 1>}, {transform_indices = @transform_3, window_bounds = array<i64: 32, 128>}]} {
    %c0 = arith.constant 0 : index
    %c0_0 = arith.constant 0 : index
    %0 = vector.load %arg2[%c0, %c0_0] : memref<32x1xf32, #tpu.memory_space<vmem>>, vector<32x1xf32>
    %c0_1 = arith.constant 0 : index
    %c0_2 = arith.constant 0 : index
    %1 = vector.load %arg3[%c0_1, %c0_2] : memref<32x1xf32, #tpu.memory_space<vmem>>, vector<32x1xf32>
    %c0_3 = arith.constant 0 : index
    %c0_4 = arith.constant 0 : index
    %c0_5 = arith.constant 0 : index
    %2 = vector.load %arg1[%c0_3, %c0_4, %c0_5] : memref<4x32x128xf32, #tpu.memory_space<vmem>>, vector<1x32x128xf32>
    %3 = vector.shape_cast %2 : vector<1x32x128xf32> to vector<32x128xf32>
    %4 = vector.broadcast %0 : vector<32x1xf32> to vector<32x128xf32>
    %5 = arith.mulf %3, %4 : vector<32x128xf32>
    %6 = vector.broadcast %1 : vector<32x1xf32> to vector<32x128xf32>
    %7 = arith.addf %5, %6 : vector<32x128xf32>
    %cst = arith.constant 0.000000e+00 : f32
    %8 = vector.broadcast %cst : f32 to vector<32x128xf32>
    %9 = arith.maximumf %7, %8 : vector<32x128xf32>
    %c1 = arith.constant 1 : index
    %c0_6 = arith.constant 0 : index
    %c0_7 = arith.constant 0 : index
    %10 = vector.load %arg1[%c1, %c0_6, %c0_7] : memref<4x32x128xf32, #tpu.memory_space<vmem>>, vector<1x32x128xf32>
    %11 = vector.shape_cast %10 : vector<1x32x128xf32> to vector<32x128xf32>
    %12 = vector.broadcast %0 : vector<32x1xf32> to vector<32x128xf32>
    %13 = arith.mulf %11, %12 : vector<32x128xf32>
    %14 = vector.broadcast %1 : vector<32x1xf32> to vector<32x128xf32>
    %15 = arith.addf %13, %14 : vector<32x128xf32>
    %cst_8 = arith.constant 0.000000e+00 : f32
    %16 = vector.broadcast %cst_8 : f32 to vector<32x128xf32>
    %17 = arith.maximumf %15, %16 : vector<32x128xf32>
    %18 = arith.addf %9, %17 : vector<32x128xf32>
    %c2 = arith.constant 2 : index
    %c0_9 = arith.constant 0 : index
    %c0_10 = arith.constant 0 : index
    %19 = vector.load %arg1[%c2, %c0_9, %c0_10] : memref<4x32x128xf32, #tpu.memory_space<vmem>>, vector<1x32x128xf32>
    %20 = vector.shape_cast %19 : vector<1x32x128xf32> to vector<32x128xf32>
    %21 = vector.broadcast %0 : vector<32x1xf32> to vector<32x128xf32>
    %22 = arith.mulf %20, %21 : vector<32x128xf32>
    %23 = vector.broadcast %1 : vector<32x1xf32> to vector<32x128xf32>
    %24 = arith.addf %22, %23 : vector<32x128xf32>
    %cst_11 = arith.constant 0.000000e+00 : f32
    %25 = vector.broadcast %cst_11 : f32 to vector<32x128xf32>
    %26 = arith.maximumf %24, %25 : vector<32x128xf32>
    %27 = arith.addf %18, %26 : vector<32x128xf32>
    %c3 = arith.constant 3 : index
    %c0_12 = arith.constant 0 : index
    %c0_13 = arith.constant 0 : index
    %28 = vector.load %arg1[%c3, %c0_12, %c0_13] : memref<4x32x128xf32, #tpu.memory_space<vmem>>, vector<1x32x128xf32>
    %29 = vector.shape_cast %28 : vector<1x32x128xf32> to vector<32x128xf32>
    %30 = vector.broadcast %0 : vector<32x1xf32> to vector<32x128xf32>
    %31 = arith.mulf %29, %30 : vector<32x128xf32>
    %32 = vector.broadcast %1 : vector<32x1xf32> to vector<32x128xf32>
    %33 = arith.addf %31, %32 : vector<32x128xf32>
    %cst_14 = arith.constant 0.000000e+00 : f32
    %34 = vector.broadcast %cst_14 : f32 to vector<32x128xf32>
    %35 = arith.maximumf %33, %34 : vector<32x128xf32>
    %36 = arith.addf %27, %35 : vector<32x128xf32>
    %cst_15 = arith.constant 2.500000e-01 : f32
    %37 = vector.broadcast %cst_15 : f32 to vector<32x128xf32>
    %38 = arith.mulf %36, %37 : vector<32x128xf32>
    %c0_16 = arith.constant 0 : index
    %c0_17 = arith.constant 0 : index
    %39 = vector.load %arg4[%c0_16, %c0_17] : memref<32x128xf32, #tpu.memory_space<vmem>>, vector<32x128xf32>
    tpu.vector_store %arg4[%c0_16, %c0_17], %38 {strides = array<i32>} : memref<32x128xf32, #tpu.memory_space<vmem>>, vector<32x128xf32>,
    return
  }
  func.func @transform_0(%arg0: i32) -> (i32, i32, i32) {
    %c0_i32 = arith.constant 0 : i32
    %c0_i32_0 = arith.constant 0 : i32
    %c0_i32_1 = arith.constant 0 : i32
    return %c0_i32, %c0_i32_0, %arg0 : i32, i32, i32
  }
  func.func @transform_1(%arg0: i32) -> (i32, i32) {
    %c0_i32 = arith.constant 0 : i32
    %c0_i32_0 = arith.constant 0 : i32
    %c0_i32_1 = arith.constant 0 : i32
    return %c0_i32, %c0_i32_0 : i32, i32
  }
  func.func @transform_2(%arg0: i32) -> (i32, i32) {
    %c0_i32 = arith.constant 0 : i32
    %c0_i32_0 = arith.constant 0 : i32
    %c0_i32_1 = arith.constant 0 : i32
    return %c0_i32, %c0_i32_0 : i32, i32
  }
  func.func @transform_3(%arg0: i32) -> (i32, i32) {
    %c0_i32 = arith.constant 0 : i32
    %c0_i32_0 = arith.constant 0 : i32
    return %c0_i32, %arg0 : i32, i32
  }
}

module attributes {stable_mosaic.version = 11 : i64} {
  func.func @kernel(%arg0: i32, %arg1: memref<32x32xf32, #tpu.memory_space<vmem>>, %arg2: memref<32x1xf32, #tpu.memory_space<vmem>>, %arg3: memref<32x1xf32, #tpu.memory_space<vmem>>, %arg4: memref<32x2xf32, #tpu.memory_space<vmem>>, %arg5: memref<10x32xf32, #tpu.memory_space<vmem>>, %arg6: memref<10x1xf32, #tpu.memory_space<vmem>>, %arg7: memref<10x2xf32, #tpu.memory_space<vmem>>) attributes {dimension_semantics = [#tpu.dimension_semantics<arbitrary>], iteration_bounds = array<i64: 1>, scalar_prefetch = 0 : i64, scratch_operands = 0 : i64, tpu.core_type = #tpu.core_type<tc>, window_params = [{pipeline_mode = #tpu.pipeline_mode<synchronous>, transform_indices = @transform_0, window_bounds = array<i64: 32, 32>}, {pipeline_mode = #tpu.pipeline_mode<synchronous>, transform_indices = @transform_1, window_bounds = array<i64: 32, 1>}, {pipeline_mode = #tpu.pipeline_mode<synchronous>, transform_indices = @transform_2, window_bounds = array<i64: 32, 1>}, {pipeline_mode = #tpu.pipeline_mode<synchronous>, transform_indices = @transform_3, window_bounds = array<i64: 32, 2>}, {pipeline_mode = #tpu.pipeline_mode<synchronous>, transform_indices = @transform_4, window_bounds = array<i64: 10, 32>}, {pipeline_mode = #tpu.pipeline_mode<synchronous>, transform_indices = @transform_5, window_bounds = array<i64: 10, 1>}, {pipeline_mode = #tpu.pipeline_mode<synchronous>, transform_indices = @transform_6, window_bounds = array<i64: 10, 2>}]} {
    %c0 = arith.constant 0 : index
    %c0_0 = arith.constant 0 : index
    %0 = vector.load %arg1[%c0, %c0_0] : memref<32x32xf32, #tpu.memory_space<vmem>>, vector<32x32xf32>
    %c0_1 = arith.constant 0 : index
    %c0_2 = arith.constant 0 : index
    %1 = vector.load %arg2[%c0_1, %c0_2] : memref<32x1xf32, #tpu.memory_space<vmem>>, vector<32x1xf32>
    %2 = vector.broadcast %1 : vector<32x1xf32> to vector<32x32xf32>
    %3 = arith.mulf %0, %2 : vector<32x32xf32>
    %c0_3 = arith.constant 0 : index
    %c0_4 = arith.constant 0 : index
    %4 = vector.load %arg3[%c0_3, %c0_4] : memref<32x1xf32, #tpu.memory_space<vmem>>, vector<32x1xf32>
    %5 = vector.broadcast %4 : vector<32x1xf32> to vector<32x32xf32>
    %6 = arith.addf %3, %5 : vector<32x32xf32>
    %cst = arith.constant 0.000000e+00 : f32
    %7 = vector.broadcast %cst : f32 to vector<32x32xf32>
    %8 = arith.maximumf %6, %7 : vector<32x32xf32>
    %c0_5 = arith.constant 0 : index
    %c0_6 = arith.constant 0 : index
    %9 = vector.load %arg4[%c0_5, %c0_6] : memref<32x2xf32, #tpu.memory_space<vmem>>, vector<32x2xf32>
    %cst_7 = arith.constant dense<0.000000e+00> : vector<32x2xf32>
    %10 = tpu.matmul %8, %9, %cst_7 {dimension_numbers = #tpu.dot_dimension_numbers<[1], [0], [0], [1], [0, 0, 1, 1], [], []>} : vector<32x32xf32>, vector<32x2xf32>, vector<32x2xf32> -> vector<32x2xf32>
    %c0_8 = arith.constant 0 : index
    %c0_9 = arith.constant 0 : index
    %11 = vector.load %arg5[%c0_8, %c0_9] : memref<10x32xf32, #tpu.memory_space<vmem>>, vector<10x32xf32>
    %cst_10 = arith.constant dense<0.000000e+00> : vector<10x2xf32>
    %12 = tpu.matmul %11, %10, %cst_10 {dimension_numbers = #tpu.dot_dimension_numbers<[1], [0], [0], [1], [0, 0, 1, 1], [], []>} : vector<10x32xf32>, vector<32x2xf32>, vector<10x2xf32> -> vector<10x2xf32>
    %c0_11 = arith.constant 0 : index
    %c0_12 = arith.constant 0 : index
    %13 = vector.load %arg6[%c0_11, %c0_12] : memref<10x1xf32, #tpu.memory_space<vmem>>, vector<10x1xf32>
    %14 = vector.broadcast %13 : vector<10x1xf32> to vector<10x2xf32>
    %15 = arith.addf %12, %14 : vector<10x2xf32>
    %c0_13 = arith.constant 0 : index
    %c0_14 = arith.constant 0 : index
    %16 = vector.load %arg7[%c0_13, %c0_14] : memref<10x2xf32, #tpu.memory_space<vmem>>, vector<10x2xf32>
    tpu.vector_store %arg7[%c0_13, %c0_14], %15 {strides = array<i32>} : memref<10x2xf32, #tpu.memory_space<vmem>>, vector<10x2xf32>,
    return
  }
  func.func @transform_0(%arg0: i32) -> (i32, i32) {
    %c0_i32 = arith.constant 0 : i32
    %c0_i32_0 = arith.constant 0 : i32
    %c0_i32_1 = arith.constant 0 : i32
    return %c0_i32, %c0_i32_0 : i32, i32
  }
  func.func @transform_1(%arg0: i32) -> (i32, i32) {
    %c0_i32 = arith.constant 0 : i32
    %c0_i32_0 = arith.constant 0 : i32
    %c0_i32_1 = arith.constant 0 : i32
    return %c0_i32, %c0_i32_0 : i32, i32
  }
  func.func @transform_2(%arg0: i32) -> (i32, i32) {
    %c0_i32 = arith.constant 0 : i32
    %c0_i32_0 = arith.constant 0 : i32
    %c0_i32_1 = arith.constant 0 : i32
    return %c0_i32, %c0_i32_0 : i32, i32
  }
  func.func @transform_3(%arg0: i32) -> (i32, i32) {
    %c0_i32 = arith.constant 0 : i32
    %c0_i32_0 = arith.constant 0 : i32
    %c0_i32_1 = arith.constant 0 : i32
    return %c0_i32, %c0_i32_0 : i32, i32
  }
  func.func @transform_4(%arg0: i32) -> (i32, i32) {
    %c0_i32 = arith.constant 0 : i32
    %c0_i32_0 = arith.constant 0 : i32
    %c0_i32_1 = arith.constant 0 : i32
    return %c0_i32, %c0_i32_0 : i32, i32
  }
  func.func @transform_5(%arg0: i32) -> (i32, i32) {
    %c0_i32 = arith.constant 0 : i32
    %c0_i32_0 = arith.constant 0 : i32
    %c0_i32_1 = arith.constant 0 : i32
    return %c0_i32, %c0_i32_0 : i32, i32
  }
  func.func @transform_6(%arg0: i32) -> (i32, i32) {
    %c0_i32 = arith.constant 0 : i32
    %c0_i32_0 = arith.constant 0 : i32
    %c0_i32_1 = arith.constant 0 : i32
    return %c0_i32, %c0_i32_0 : i32, i32
  }
}

</mosaic_0001>

<bundles_post_ra>
// kernel: densenet_forward.13
= control target key start
LH: loop header
LB: loop body
LE: loop exit
PB: predicated region body
PF: predicated region fallthrough
CT: control target
= control target key end

     0   :  { %s709_s9 = smov 0   ;;  %s711_s10 = smov 0   ;;  %s917_s0 = inlined_call_operand.vmem [shape: f32[16,147], index: 0, kind: input, shape index: {}]   ;;  %s918_s1 = inlined_call_operand.vmem [shape: f32[147,512], index: 1, kind: input, shape index: {}]   ;;  %s919_s2 = inlined_call_operand.vmem [shape: f32[16,512], index: 2, kind: output, shape index: {}]  }
   0x1   :  { %s713_s11 = smov 0   ;;  %s715_s12 = smov 0  }
   0x2   :  { %s717_s13 = smov 0  }
   0x3 LB: > { %s24_s14 = sadd.s32 1, %s688_s12  ;;  %s554_s15 = sadd.s32 4294967295, %s692_s13   ;;  %s692_s13 = sphi %s717_s13, %s12_s13   ;;  %s688_s12 = sphi %s715_s12, %s924_s12   ;;  %s684_s11 = sphi %s713_s11, %s923_s11   ;;  %s680_s10 = sphi %s711_s10, %s922_s10   ;;  %s676_s9 = sphi %s709_s9, %s921_s9  }
   0x4   : > { %p26_p0 = scmp.ge.s32.totalorder %s24_s14, 2  ;;  %p66_p1 = scmp.ne.s32.totalorder %s680_s10, %s676_s9 }
   0x5   : > { %p67_p2 = scmp.eq.s32.totalorder %s692_s13, 0  ;;  %p96_p4 = scmp.eq.s32.totalorder %s554_s15, 1 }
   0x6   : > { %s926_s14 = smov (%p26_p0, %s24_s14), 0  ;;  %s59_s17 = sadd.s32 1, %s680_s10 }
   0x7   : > { %p68_p3 = por %p67_p2, %p66_p1  ;;  %s55_s16 = ssub.s32 %s688_s12, %s926_s14 }
   0x8   : > { %p57_p5 = scmp.eq.s32.totalorder %s55_s16, 0  ;;  %p744_p6 = por %p96_p4, %p66_p1 }
   0x9   : > { %p558_p7 = scmp.ge.s32.totalorder %s692_s13, 2 }
   0xa   : > { %s749_s19 = scalar_select %p57_p5, %s680_s10, %s59_s17  }
   0xb   : > { %127 = sbr.rel (%p558_p7) target bundleno = 39 (0x27), region = 20 }
  0x10   : > { %130 = sbr.rel (!%p68_p3) target bundleno = 39 (0x27), region = 24  ;;  %s132_s20 = sand.u32 (%p68_p3), 1, %s680_s10  }
  0x11   : > { %s572_s21 = sshll.u32 (%p68_p3), %s688_s12, 4  ;;  %s612_s22 = smul.u32 (%p68_p3), 304, %s132_s20 }
  0x12   : > { %s757_s25 = scalar_lea.vmem (%p68_p3), %s918_s1, %s572_s21 }
  0x13   : > { %v153_v0 = vld [vmem:[%s757_s25] sm:$0xff] (%p68_p3)  ;;  %v155_v1 = vld [vmem:[%s757_s25 + $0x8] sm:$0xff] (%p68_p3)  ;;  %s765_s26 = scalar_lea.vmem (%p68_p3), [#allocation3], %s612_s22 }
  0x14   : > { %v157_v2 = vld [vmem:[%s757_s25 + $0x20] sm:$0xff] (%p68_p3)  ;;  %v159_v3 = vld [vmem:[%s757_s25 + $0x28] sm:$0xff] (%p68_p3)  ;;  %154 = vst [vmem:[%s765_s26] sm:$0xff] (%p68_p3), %v153_v0  ;;  %156 = vst [vmem:[%s765_s26 + $0x8] sm:$0xff] (%p68_p3), %v155_v1 }
  0x15   : > { %v161_v4 = vld [vmem:[%s757_s25 + $0x40] sm:$0xff]  ;;  %v163_v5 = vld [vmem:[%s757_s25 + $0x48] sm:$0xff]  ;;  %158 = vst [vmem:[%s765_s26 + $0x10] sm:$0xff] %v157_v2  ;;  %160 = vst [vmem:[%s765_s26 + $0x18] sm:$0xff] %v159_v3 }
  0x16   : > { %162 = vst [vmem:[%s765_s26 + $0x20] sm:$0xff] %v161_v4  ;;  %164 = vst [vmem:[%s765_s26 + $0x28] sm:$0xff] %v163_v5  ;;  %v165_v6 = vld [vmem:[%s757_s25 + $0x60] sm:$0xff]  ;;  %v167_v7 = vld [vmem:[%s757_s25 + $0x68] sm:$0xff] }
  0x17   : > { %v169_v8 = vld [vmem:[%s757_s25 + $0x80] sm:$0xff]  ;;  %166 = vst [vmem:[%s765_s26 + $0x30] sm:$0xff] %v165_v6  ;;  %168 = vst [vmem:[%s765_s26 + $0x38] sm:$0xff] %v167_v7  ;;  %v171_v9 = vld [vmem:[%s757_s25 + $0x88] sm:$0xff] }
  0x18   : > { %170 = vst [vmem:[%s765_s26 + $0x40] sm:$0xff] %v169_v8  ;;  %v173_v10 = vld [vmem:[%s757_s25 + $0xa0] sm:$0xff]  ;;  %v175_v11 = vld [vmem:[%s757_s25 + $0xa8] sm:$0xff]  ;;  %172 = vst [vmem:[%s765_s26 + $0x48] sm:$0xff] %v171_v9 }
  0x19   : > { %174 = vst [vmem:[%s765_s26 + $0x50] sm:$0xff] %v173_v10  ;;  %176 = vst [vmem:[%s765_s26 + $0x58] sm:$0xff] %v175_v11  ;;  %v177_v12 = vld [vmem:[%s757_s25 + $0xc0] sm:$0xff]  ;;  %v179_v13 = vld [vmem:[%s757_s25 + $0xc8] sm:$0xff] }
  0x1a   : > { %v181_v14 = vld [vmem:[%s757_s25 + $0xe0] sm:$0xff]  ;;  %178 = vst [vmem:[%s765_s26 + $0x60] sm:$0xff] %v177_v12  ;;  %180 = vst [vmem:[%s765_s26 + $0x68] sm:$0xff] %v179_v13  ;;  %v183_v15 = vld [vmem:[%s757_s25 + $0xe8] sm:$0xff] }
  0x1b   : > { %182 = vst [vmem:[%s765_s26 + $0x70] sm:$0xff] %v181_v14  ;;  %v185_v16 = vld [vmem:[%s757_s25 + $0x100] sm:$0xff]  ;;  %v187_v17 = vld [vmem:[%s757_s25 + $0x108] sm:$0xff]  ;;  %184 = vst [vmem:[%s765_s26 + $0x78] sm:$0xff] %v183_v15 }
  0x1c   : > { %186 = vst [vmem:[%s765_s26 + $0x80] sm:$0xff] %v185_v16  ;;  %188 = vst [vmem:[%s765_s26 + $0x88] sm:$0xff] %v187_v17  ;;  %v189_v18 = vld [vmem:[%s757_s25 + $0x120] sm:$0xff]  ;;  %v191_v19 = vld [vmem:[%s757_s25 + $0x128] sm:$0xff] }
  0x1d   : > { %v193_v20 = vld [vmem:[%s757_s25 + $0x140] sm:$0xff]  ;;  %190 = vst [vmem:[%s765_s26 + $0x90] sm:$0xff] %v189_v18  ;;  %192 = vst [vmem:[%s765_s26 + $0x98] sm:$0xff] %v191_v19  ;;  %v195_v21 = vld [vmem:[%s757_s25 + $0x148] sm:$0xff] }
  0x1e   : > { %194 = vst [vmem:[%s765_s26 + $0xa0] sm:$0xff] %v193_v20  ;;  %v197_v22 = vld [vmem:[%s757_s25 + $0x160] sm:$0xff]  ;;  %v199_v23 = vld [vmem:[%s757_s25 + $0x168] sm:$0xff]  ;;  %196 = vst [vmem:[%s765_s26 + $0xa8] sm:$0xff] %v195_v21 }
  0x1f   : > { %198 = vst [vmem:[%s765_s26 + $0xb0] sm:$0xff] %v197_v22  ;;  %200 = vst [vmem:[%s765_s26 + $0xb8] sm:$0xff] %v199_v23  ;;  %v201_v24 = vld [vmem:[%s757_s25 + $0x180] sm:$0xff]  ;;  %v203_v25 = vld [vmem:[%s757_s25 + $0x188] sm:$0xff] }
  0x20   : > { %v205_v26 = vld [vmem:[%s757_s25 + $0x1a0] sm:$0xff]  ;;  %202 = vst [vmem:[%s765_s26 + $0xc0] sm:$0xff] %v201_v24  ;;  %204 = vst [vmem:[%s765_s26 + $0xc8] sm:$0xff] %v203_v25  ;;  %v207_v27 = vld [vmem:[%s757_s25 + $0x1a8] sm:$0xff] }
  0x21   : > { %206 = vst [vmem:[%s765_s26 + $0xd0] sm:$0xff] %v205_v26  ;;  %v209_v28 = vld [vmem:[%s757_s25 + $0x1c0] sm:$0xff]  ;;  %v211_v29 = vld [vmem:[%s757_s25 + $0x1c8] sm:$0xff]  ;;  %208 = vst [vmem:[%s765_s26 + $0xd8] sm:$0xff] %v207_v27 }
  0x22   : > { %210 = vst [vmem:[%s765_s26 + $0xe0] sm:$0xff] %v209_v28  ;;  %212 = vst [vmem:[%s765_s26 + $0xe8] sm:$0xff] %v211_v29  ;;  %v213_v30 = vld [vmem:[%s757_s25 + $0x1e0] sm:$0xff]  ;;  %v215_v31 = vld [vmem:[%s757_s25 + $0x1e8] sm:$0xff] }
  0x23   : > { %v217_v32 = vld [vmem:[%s757_s25 + $0x200] sm:$0xff]  ;;  %214 = vst [vmem:[%s765_s26 + $0xf0] sm:$0xff] %v213_v30  ;;  %216 = vst [vmem:[%s765_s26 + $0xf8] sm:$0xff] %v215_v31  ;;  %v219_v33 = vld [vmem:[%s757_s25 + $0x208] sm:$0xff] }
  0x24   : > { %218 = vst [vmem:[%s765_s26 + $0x100] sm:$0xff] %v217_v32  ;;  %v221_v34 = vld [vmem:[%s757_s25 + $0x220] sm:$0xff]  ;;  %v223_v35 = vld [vmem:[%s757_s25 + $0x228] sm:$0xff]  ;;  %220 = vst [vmem:[%s765_s26 + $0x108] sm:$0xff] %v219_v33 }
  0x25   : > { %222 = vst [vmem:[%s765_s26 + $0x110] sm:$0xff] %v221_v34  ;;  %224 = vst [vmem:[%s765_s26 + $0x118] sm:$0xff] %v223_v35  ;;  %v225_v36 = vld [vmem:[%s757_s25 + $0x240] sm:$0xff]  ;;  %v227_v37 = vld [vmem:[%s757_s25 + $0x248] sm:$0xff] }
  0x26   : > { %226 = vst [vmem:[%s765_s26 + $0x120] sm:$0xff] %v225_v36  ;;  %228 = vst [vmem:[%s765_s26 + $0x128] sm:$0xff] %v227_v37 }
  0x27 PF: > { %p561_p8 = scmp.ge.s32.totalorder %s692_s13, 1  ;;  %p233_p9 = scmp.lt.s32.totalorder %s692_s13, 3 }
  0x29   : > { %p234_p10 = pnand %p561_p8, %p233_p9 }
  0x2a   : > { %s240_s27 = sand.u32 (!%p234_p10), 1, %s676_s9  }
  0x2b   : > { %237 = sbr.rel (%p234_p10) target bundleno = 292 (0x124), region = 47  ;;  %s562_s16 = sshll.u32 (!%p234_p10), %s240_s27, 5 }
  0x2c   : > { %s613_s4 = smul.u32 (!%p234_p10), 304, %s240_s27  ;;  %s264_s17 = scalar_lea.vmem (!%p234_p10), [#allocation4], %s562_s16 }
  0x2e   : > { %s848_s5 = scalar_lea.vmem (!%p234_p10), [#allocation3], %s613_s4 }
  0x30   : > { %v325_v38 = vld [vmem:[%s917_s0 + $0x8] sm:$0xff]  ;;  %vm328_vm0 = vcmask 154624   ;;  %v327_v39 = vld [vmem:[%s917_s0 + $0x18] sm:$0xff]  ;;  %v312_v41 = vld [vmem:[%s848_s5 + $0xf0] sm:$0xff]  ;;  %vm335_vm1 = vcmask 1042432   ;;  %s573_s20 = sshll.u32 (%p744_p6), %s684_s11, 4 }
  0x31   : > { %565 = vmatprep.mubr.msk.f32.mxu0 %vm328_vm0, %v325_v38  ;;  %566 = vmatprep.mubr.msk.f32.mxu1 %vm328_vm0, %v327_v39  ;;  %v313_v40 = vld [vmem:[%s848_s5 + $0xf8] sm:$0xff]  ;;  %v311_v42 = vld [vmem:[%s848_s5 + $0xe8] sm:$0xff]  ;;  %v310_v43 = vld [vmem:[%s848_s5 + $0xe0] sm:$0xff]  ;;  %s447_s22 = scalar_lea.vmem (%p744_p6), %s919_s2, %s573_s20 }
  0x32   : > { %342 = vmatprep.subr.mxu0 %v313_v40  ;;  %574 = vmatprep.subr.mxu1 %v313_v40  ;;  %v309_v44 = vld [vmem:[%s848_s5 + $0xd8] sm:$0xff]  ;;  %v308_v45 = vld [vmem:[%s848_s5 + $0xd0] sm:$0xff]  ;;  %v307_v46 = vld [vmem:[%s848_s5 + $0xc8] sm:$0xff] }
  0x33   : > { %343 = vmatpush1.msra.mxu0 %v312_v41  ;;  %593 = vmatpush1.msra.mxu1 %v312_v41  ;;  %v306_v47 = vld [vmem:[%s848_s5 + $0xc0] sm:$0xff]  ;;  %v305_v48 = vld [vmem:[%s848_s5 + $0xb8] sm:$0xff]  ;;  %v304_v49 = vld [vmem:[%s848_s5 + $0xb0] sm:$0xff] }
  0x34   : > { %344 = vmatprep.subr.mxu0 %v311_v42  ;;  %575 = vmatprep.subr.mxu1 %v311_v42  ;;  %v303_v50 = vld [vmem:[%s848_s5 + $0xa8] sm:$0xff]  ;;  %v302_v51 = vld [vmem:[%s848_s5 + $0xa0] sm:$0xff]  ;;  %v301_v52 = vld [vmem:[%s848_s5 + $0x98] sm:$0xff] }
  0x35   : > { %345 = vmatpush1.msra.mxu0 %v310_v43  ;;  %594 = vmatpush1.msra.mxu1 %v310_v43  ;;  %v300_v53 = vld [vmem:[%s848_s5 + $0x90] sm:$0xff]  ;;  %v299_v54 = vld [vmem:[%s848_s5 + $0x88] sm:$0xff]  ;;  %v298_v55 = vld [vmem:[%s848_s5 + $0x80] sm:$0xff] }
  0x36   : > { %346 = vmatprep.subr.mxu0 %v309_v44  ;;  %576 = vmatprep.subr.mxu1 %v309_v44  ;;  %v297_v56 = vld [vmem:[%s848_s5 + $0x78] sm:$0xff]  ;;  %v296_v57 = vld [vmem:[%s848_s5 + $0x70] sm:$0xff]  ;;  %v295_v58 = vld [vmem:[%s848_s5 + $0x68] sm:$0xff] }
  0x37   : > { %347 = vmatpush1.msra.mxu0 %v308_v45  ;;  %595 = vmatpush1.msra.mxu1 %v308_v45  ;;  %v294_v59 = vld [vmem:[%s848_s5 + $0x60] sm:$0xff]  ;;  %v293_v60 = vld [vmem:[%s848_s5 + $0x58] sm:$0xff]  ;;  %v292_v61 = vld [vmem:[%s848_s5 + $0x50] sm:$0xff] }
  0x38   : > { %348 = vmatprep.subr.mxu0 %v307_v46  ;;  %577 = vmatprep.subr.mxu1 %v307_v46  ;;  %v291_v62 = vld [vmem:[%s848_s5 + $0x48] sm:$0xff]  ;;  %v290_v63 = vld [vmem:[%s848_s5 + $0x40] sm:$0xff]  ;;  %v289_v0 = vld [vmem:[%s848_s5 + $0x38] sm:$0xff] }
  0x39   : > { %349 = vmatpush1.msra.mxu0 %v306_v47  ;;  %596 = vmatpush1.msra.mxu1 %v306_v47  ;;  %v288_v1 = vld [vmem:[%s848_s5 + $0x30] sm:$0xff]  ;;  %v287_v2 = vld [vmem:[%s848_s5 + $0x28] sm:$0xff]  ;;  %v286_v3 = vld [vmem:[%s848_s5 + $0x20] sm:$0xff] }
  0x3a   : > { %350 = vmatprep.subr.mxu0 %v305_v48  ;;  %578 = vmatprep.subr.mxu1 %v305_v48  ;;  %v285_v4 = vld [vmem:[%s848_s5 + $0x18] sm:$0xff]  ;;  %v284_v5 = vld [vmem:[%s848_s5 + $0x10] sm:$0xff]  ;;  %v283_v6 = vld [vmem:[%s848_s5 + $0x8] sm:$0xff] }
  0x3b   : > { %351 = vmatpush1.msra.mxu0 %v304_v49  ;;  %597 = vmatpush1.msra.mxu1 %v304_v49  ;;  %v282_v7 = vld [vmem:[%s848_s5] sm:$0xff]  ;;  %v319_v8 = vld [vmem:[%s848_s5 + $0x128] sm:$0x7]  ;;  %v317_v10 = vld [vmem:[%s848_s5 + $0x118] sm:$0xff] }
  0x3c   : > { %352 = vmatprep.subr.mxu0 %v303_v50  ;;  %579 = vmatprep.subr.mxu1 %v303_v50  ;;  %v318_v9 = vld [vmem:[%s848_s5 + $0x120] sm:$0x7]  ;;  %v316_v11 = vld [vmem:[%s848_s5 + $0x110] sm:$0xff]  ;;  %v315_v12 = vld [vmem:[%s848_s5 + $0x108] sm:$0xff] }
  0x3d   : > { %353 = vmatpush1.msra.mxu0 %v302_v51  ;;  %598 = vmatpush1.msra.mxu1 %v302_v51  ;;  %v314_v13 = vld [vmem:[%s848_s5 + $0x100] sm:$0xff] }
  0x3e   : > { %354 = vmatprep.subr.mxu0 %v301_v52  ;;  %580 = vmatprep.subr.mxu1 %v301_v52  ;;  %v324_v14 = vld [vmem:[%s917_s0] sm:$0xff]  ;;  %v326_v15 = vld [vmem:[%s917_s0 + $0x10] sm:$0xff] }
  0x3f   : > { %355 = vmatpush1.msra.mxu0 %v300_v53  ;;  %599 = vmatpush1.msra.mxu1 %v300_v53 }
  0x40   : > { %356 = vmatprep.subr.mxu0 %v299_v54  ;;  %581 = vmatprep.subr.mxu1 %v299_v54 }
  0x41   : > { %357 = vmatpush1.msra.mxu0 %v298_v55  ;;  %600 = vmatpush1.msra.mxu1 %v298_v55 }
  0x42   : > { %358 = vmatprep.subr.mxu0 %v297_v56  ;;  %582 = vmatprep.subr.mxu1 %v297_v56 }
  0x43   : > { %359 = vmatpush1.msra.mxu0 %v296_v57  ;;  %601 = vmatpush1.msra.mxu1 %v296_v57 }
  0x44   : > { %360 = vmatprep.subr.mxu0 %v295_v58  ;;  %583 = vmatprep.subr.mxu1 %v295_v58 }
  0x45   : > { %361 = vmatpush1.msra.mxu0 %v294_v59  ;;  %602 = vmatpush1.msra.mxu1 %v294_v59 }
  0x46   : > { %362 = vmatprep.subr.mxu0 %v293_v60  ;;  %584 = vmatprep.subr.mxu1 %v293_v60 }
  0x47   : > { %363 = vmatpush1.msra.mxu0 %v292_v61  ;;  %603 = vmatpush1.msra.mxu1 %v292_v61 }
  0x48   : > { %364 = vmatprep.subr.mxu0 %v291_v62  ;;  %585 = vmatprep.subr.mxu1 %v291_v62 }
  0x49   : > { %365 = vmatpush1.msra.mxu0 %v290_v63  ;;  %604 = vmatpush1.msra.mxu1 %v290_v63 }
  0x4a   : > { %366 = vmatprep.subr.mxu0 %v289_v0  ;;  %586 = vmatprep.subr.mxu1 %v289_v0 }
  0x4b   : > { %367 = vmatpush1.msra.mxu0 %v288_v1  ;;  %605 = vmatpush1.msra.mxu1 %v288_v1 }
  0x4c   : > { %368 = vmatprep.subr.mxu0 %v287_v2  ;;  %587 = vmatprep.subr.mxu1 %v287_v2 }
  0x4d   : > { %369 = vmatpush1.msra.mxu0 %v286_v3  ;;  %606 = vmatpush1.msra.mxu1 %v286_v3 }
  0x4e   : > { %370 = vmatprep.subr.mxu0 %v285_v4  ;;  %588 = vmatprep.subr.mxu1 %v285_v4 }
  0x4f   : > { %371 = vmatpush1.msra.mxu0 %v284_v5  ;;  %607 = vmatpush1.msra.mxu1 %v284_v5 }
  0x50   : > { %372 = vmatprep.subr.mxu0 %v283_v6  ;;  %589 = vmatprep.subr.mxu1 %v283_v6 }
  0x51   : > { %373 = vmatpush1.msra.mxu0 %v282_v7  ;;  %608 = vmatpush1.msra.mxu1 %v282_v7 }
  0x52   : > { %563 = vmatprep.subr.msk.mxu0 %vm335_vm1, %v319_v8  ;;  %590 = vmatprep.subr.msk.mxu1 %vm335_vm1, %v319_v8 }
  0x53   : > { %564 = vmatpush2.msk.msra.mxu0 %vm335_vm1, %v318_v9  ;;  %609 = vmatpush2.msk.msra.mxu1 %vm335_vm1, %v318_v9 }
  0x54   : > { %402 = vmatprep.subr.mxu0 %v317_v10  ;;  %591 = vmatprep.subr.mxu1 %v317_v10 }
  0x55   : > { %403 = vmatpush2.msra.mxu0 %v316_v11  ;;  %610 = vmatpush2.msra.mxu1 %v316_v11 }
  0x56   : > { %404 = vmatprep.subr.mxu0 %v315_v12  ;;  %592 = vmatprep.subr.mxu1 %v315_v12 }
  0x57   : > { %405 = vmatpush2.msra.mxu0 %v314_v13  ;;  %611 = vmatpush2.msra.mxu1 %v314_v13 }
  0x58   : > { %407 = vmatmul.mubr.f32.vlgmr.msra.gmra.mxu0 %v324_v14  ;;  %413 = vmatmul.mubr.f32.vlgmr.msra.gmra.mxu1 %v326_v15 }
 0x117   : > { %444 = sbr.rel (!%p744_p6) target bundleno = 292 (0x124), region = 63 }
 0x118   : > { %v408_v16 = vpop.f32.mrf.mxu0  ;;  %v414_v17 = vpop.f32.mrf.mxu1 }
 0x119   : > { %434 = vst [vmem:[%s264_s17] sm:$0xff] %v408_v16  ;;  %436 = vst [vmem:[%s264_s17 + $0x10] sm:$0xff] %v414_v17 }
 0x11a   : > { %v410_v18 = vpop.f32.mrf.mxu0  ;;  %v416_v19 = vpop.f32.mrf.mxu1 }
 0x11b   : > { %435 = vst [vmem:[%s264_s17 + $0x8] sm:$0xff] %v410_v18  ;;  %437 = vst [vmem:[%s264_s17 + $0x18] sm:$0xff] %v416_v19 }
 0x120   : > { %v460_v20 = vld [vmem:[%s264_s17] sm:$0xff]  ;;  %v464_v22 = vld [vmem:[%s264_s17 + $0x10] sm:$0xff] }
 0x121   : > { %461 = vst [vmem:[%s447_s22] sm:$0xff] %v460_v20  ;;  %465 = vst [vmem:[%s447_s22 + $0x20] sm:$0xff] %v464_v22 }
 0x122   : > { %v462_v21 = vld [vmem:[%s264_s17 + $0x8] sm:$0xff]  ;;  %v466_v23 = vld [vmem:[%s264_s17 + $0x18] sm:$0xff] }
 0x123   : > { %463 = vst [vmem:[%s447_s22 + $0x8] sm:$0xff] %v462_v21  ;;  %467 = vst [vmem:[%s447_s22 + $0x28] sm:$0xff] %v466_v23 }
 0x124 PF: > { %s12_s13 = sadd.s32 1, %s692_s13   ;;  %s921_s9 = smov %s680_s10 }
 0x125   : > { %p9_p11 = scmp.ge.s32.totalorder %s12_s13, 4   ;;  %s922_s10 = smov %s749_s19 }
 0x126   : > { %s923_s11 = smov %s688_s12  ;;  %s924_s12 = smov %s926_s14 }
 0x127   :  { %11 = sbr.rel (!%p9_p11) target bundleno = 3 (0x3), region = 120 }

// kernel: densenet_forward.14
= control target key start
LH: loop header
LB: loop body
LE: loop exit
PB: predicated region body
PF: predicated region fallthrough
CT: control target
= control target key end

     0   :  { %v159_v0 = vmov 0   ;;  %s252_s2 = inlined_call_operand.vmem [shape: f32[16,1], index: 2, kind: input, shape index: {}]   ;;  %s253_s1 = inlined_call_operand.vmem [shape: f32[16,1], index: 1, kind: input, shape index: {}]   ;;  %s254_s0 = inlined_call_operand.vmem [shape: f32[9,16,128], index: 0, kind: input, shape index: {}]   ;;  %s255_s3 = inlined_call_operand.vmem [shape: f32[16,128], index: 3, kind: output, shape index: {}]  }
   0x1   :  { %158 = vset.pattern.permute.xlu1 %v159_v0  ;;  %157 = vset.pattern.permute.xlu0 %v159_v0  ;;  %v16_v1 = vld [vmem:[%s252_s2] sm:$0xff]  ;;  %v17_v3 = vld [vmem:[%s252_s2 + $0x8] sm:$0xff]  ;;  %v140_v6 = vld [vmem:[%s254_s0 + $0x10] sm:$0xff] }
   0x2   :  { %v14_v2 = vld [vmem:[%s253_s1] sm:$0xff]  ;;  %34 = vperm.xlu1 %158, %v16_v1   ;;  %v15_v4 = vld [vmem:[%s253_s1 + $0x8] sm:$0xff]  ;;  %v144_v8 = vld [vmem:[%s254_s0 + $0x30] sm:$0xff] }
   0x3   :  { %22 = vperm.xlu0 %157, %v14_v2   ;;  %v18_v5 = vld [vmem:[%s254_s0] sm:$0xff]  ;;  %v148_v10 = vld [vmem:[%s254_s0 + $0x50] sm:$0xff]  ;;  %v19_v26 = vld [vmem:[%s254_s0 + $0x8] sm:$0xff] }
   0x4   :  { %v142_v7 = vld [vmem:[%s254_s0 + $0x20] sm:$0xff]  ;;  %v152_v23 = vld [vmem:[%s254_s0 + $0x70] sm:$0xff]  ;;  %v141_v27 = vld [vmem:[%s254_s0 + $0x18] sm:$0xff] }
   0x5   :  { %v146_v9 = vld [vmem:[%s254_s0 + $0x40] sm:$0xff]  ;;  %v143_v31 = vld [vmem:[%s254_s0 + $0x28] sm:$0xff]  ;;  %v145_v32 = vld [vmem:[%s254_s0 + $0x38] sm:$0xff] }
   0x6   :  { %39 = vperm.xlu1 %158, %v17_v3   ;;  %v150_v16 = vld [vmem:[%s254_s0 + $0x60] sm:$0xff]  ;;  %v147_v33 = vld [vmem:[%s254_s0 + $0x48] sm:$0xff]  ;;  %v149_v42 = vld [vmem:[%s254_s0 + $0x58] sm:$0xff] }
   0x7   :  { %27 = vperm.xlu0 %157, %v15_v4   ;;  %v154_v39 = vld [vmem:[%s254_s0 + $0x80] sm:$0xff]  ;;  %v151_v56 = vld [vmem:[%s254_s0 + $0x68] sm:$0xff]  ;;  %v153_v0 = vld [vmem:[%s254_s0 + $0x78] sm:$0xff] }
  0x7d   :  { %v35_v17 = vpop.permute.xlu1 %34 }
  0x7e   :  { %v23_v11 = vpop.permute.xlu0 %22 }
  0x7f   :  { %v30_v12 = vmul.f32 %v23_v11, %v18_v5  ;;  %v49_v13 = vmul.f32 %v140_v6, %v23_v11  ;;  %v60_v14 = vmul.f32 %v142_v7, %v23_v11  ;;  %v71_v15 = vmul.f32 %v144_v8, %v23_v11  ;;  %v155_v8 = vld [vmem:[%s254_s0 + $0x88] sm:$0xff] }
  0x80   :  { %v82_v18 = vmul.f32 %v146_v9, %v23_v11  ;;  %v93_v19 = vmul.f32 %v148_v10, %v23_v11  ;;  %v104_v24 = vmul.f32 %v150_v16, %v23_v11  ;;  %v115_v36 = vmul.f32 %v152_v23, %v23_v11 }
  0x81   :  { %v42_v20 = vadd.f32 %v35_v17, %v30_v12  ;;  %v51_v21 = vadd.f32 %v49_v13, %v35_v17  ;;  %v62_v22 = vadd.f32 %v60_v14, %v35_v17  ;;  %v73_v30 = vadd.f32 %v71_v15, %v35_v17  ;;  %v40_v44 = vpop.permute.xlu1 %39 }
  0x82   :  { %v28_v25 = vpop.permute.xlu0 %27  ;;  %v84_v34 = vadd.f32 %v82_v18, %v35_v17  ;;  %v95_v35 = vadd.f32 %v93_v19, %v35_v17  ;;  %v106_v43 = vadd.f32 %v104_v24, %v35_v17  ;;  %v126_v53 = vmul.f32 %v154_v39, %v23_v11 }
  0x83   :  { %v44_v28 = vmax.f32 %v42_v20, 0.0  ;;  %v53_v29 = vmax.f32 %v51_v21, 0.0  ;;  %v64_v38 = vmax.f32 %v62_v22, 0.0  ;;  %v31_v40 = vmul.f32 %v28_v25, %v19_v26 }
  0x84   :  { %v50_v41 = vmul.f32 %v141_v27, %v28_v25  ;;  %v61_v45 = vmul.f32 %v143_v31, %v28_v25  ;;  %v72_v46 = vmul.f32 %v145_v32, %v28_v25  ;;  %v83_v47 = vmul.f32 %v147_v33, %v28_v25 }
  0x85   :  { %v55_v37 = vmax.f32 %v44_v28, %v53_v29  ;;  %v75_v49 = vmax.f32 %v73_v30, 0.0  ;;  %v43_v50 = vadd.f32 %v40_v44, %v31_v40  ;;  %v86_v52 = vmax.f32 %v84_v34, 0.0 }
  0x86   :  { %v52_v51 = vadd.f32 %v50_v41, %v40_v44  ;;  %v63_v54 = vadd.f32 %v61_v45, %v40_v44  ;;  %v94_v55 = vmul.f32 %v149_v42, %v28_v25  ;;  %v74_v60 = vadd.f32 %v72_v46, %v40_v44 }
  0x87   :  { %v66_v48 = vmax.f32 %v55_v37, %v64_v38  ;;  %v45_v58 = vmax.f32 %v43_v50, 0.0  ;;  %v97_v61 = vmax.f32 %v95_v35, 0.0  ;;  %v117_v62 = vadd.f32 %v115_v36, %v35_v17 }
  0x88   :  { %v54_v59 = vmax.f32 %v52_v51, 0.0  ;;  %v85_v63 = vadd.f32 %v83_v47, %v40_v44  ;;  %v65_v3 = vmax.f32 %v63_v54, 0.0  ;;  %v105_v4 = vmul.f32 %v151_v56, %v28_v25 }
  0x89   :  { %v77_v57 = vmax.f32 %v66_v48, %v75_v49  ;;  %v108_v5 = vmax.f32 %v106_v43, 0.0  ;;  %v128_v6 = vadd.f32 %v126_v53, %v35_v17  ;;  %v96_v7 = vadd.f32 %v94_v55, %v40_v44 }
  0x8a   :  { %v56_v2 = vmax.f32 %v45_v58, %v54_v59  ;;  %v76_v11 = vmax.f32 %v74_v60, 0.0  ;;  %v116_v12 = vmul.f32 %v153_v0, %v28_v25  ;;  %v119_v13 = vmax.f32 %v117_v62, 0.0 }
  0x8b   :  { %v88_v1 = vmax.f32 %v77_v57, %v86_v52  ;;  %v87_v14 = vmax.f32 %v85_v63, 0.0  ;;  %v107_v18 = vadd.f32 %v105_v4, %v40_v44  ;;  %v127_v19 = vmul.f32 %v155_v8, %v28_v25 }
  0x8c   :  { %v67_v10 = vmax.f32 %v56_v2, %v65_v3  ;;  %v130_v20 = vmax.f32 %v128_v6, 0.0  ;;  %v98_v23 = vmax.f32 %v96_v7, 0.0  ;;  %v118_v17 = vadd.f32 %v116_v12, %v40_v44 }
  0x8d   :  { %v99_v9 = vmax.f32 %v88_v1, %v97_v61  ;;  %v109_v27 = vmax.f32 %v107_v18, 0.0  ;;  %v129_v28 = vadd.f32 %v127_v19, %v40_v44 }
  0x8e   :  { %v78_v16 = vmax.f32 %v67_v10, %v76_v11  ;;  %v120_v30 = vmax.f32 %v118_v17, 0.0 }
  0x8f   :  { %v110_v15 = vmax.f32 %v99_v9, %v108_v5  ;;  %v131_v32 = vmax.f32 %v129_v28, 0.0 }
  0x90   :  { %v89_v22 = vmax.f32 %v78_v16, %v87_v14 }
  0x91   :  { %v121_v21 = vmax.f32 %v110_v15, %v119_v13 }
  0x92   :  { %v100_v26 = vmax.f32 %v89_v22, %v98_v23 }
  0x93   :  { %v132_v24 = vmax.f32 %v121_v21, %v130_v20 }
  0x94   :  { %v111_v29 = vmax.f32 %v100_v26, %v109_v27 }
  0x95   :  { %134 = vst [vmem:[%s255_s3] sm:$0xff] %v132_v24 }
  0x96   :  { %v122_v31 = vmax.f32 %v111_v29, %v120_v30 }
  0x98   :  { %v133_v33 = vmax.f32 %v122_v31, %v131_v32 }
  0x9a   :  { %135 = vst [vmem:[%s255_s3 + $0x8] sm:$0xff] %v133_v33 }

// kernel: densenet_forward.15
= control target key start
LH: loop header
LB: loop body
LE: loop exit
PB: predicated region body
PF: predicated region fallthrough
CT: control target
= control target key end

     0   :  { %v172_v0 = vmov 0   ;;  %vm59_vm0 = vcmask 130048   ;;  %s230_s3 = inlined_call_operand.vmem [shape: f32[16,1], index: 3, kind: input, shape index: {}]   ;;  %s231_s2 = inlined_call_operand.vmem [shape: f32[16,1], index: 2, kind: input, shape index: {}]   ;;  %s232_s0 = inlined_call_operand.vmem [shape: f32[16,16], index: 0, kind: input, shape index: {}]   ;;  %s233_s1 = inlined_call_operand.vmem [shape: f32[16,128], index: 1, kind: input, shape index: {}]   ;;  %s234_s4 = inlined_call_operand.vmem [shape: f32[16,128], index: 4, kind: output, shape index: {}]  }
   0x1   :  { %171 = vset.pattern.permute.xlu1 %v172_v0  ;;  %170 = vset.pattern.permute.xlu0 %v172_v0  ;;  %v40_v1 = vld [vmem:[%s230_s3 + $0x8] sm:$0xff]  ;;  %v39_v3 = vld [vmem:[%s230_s3] sm:$0xff] }
   0x2   :  { %v26_v2 = vld [vmem:[%s231_s2 + $0x8] sm:$0xff]  ;;  %48 = vperm.xlu1 %171, %v40_v1   ;;  %v25_v4 = vld [vmem:[%s231_s2] sm:$0xff] }
   0x3   :  { %34 = vperm.xlu0 %170, %v26_v2   ;;  %v57_v5 = vld [vmem:[%s232_s0] sm:$0xff]  ;;  %v24_v6 = vld [vmem:[%s233_s1 + $0x8] sm:$0xff] }
   0x4   :  { %166 = vmatprep.mubr.msk.f32.mxu0 %vm59_vm0, %v57_v5  ;;  %v23_v10 = vld [vmem:[%s233_s1] sm:$0xff]  ;;  %v58_v18 = vld [vmem:[%s232_s0 + $0x8] sm:$0xff] }
   0x6   :  { %43 = vperm.xlu1 %171, %v39_v3  }
   0x7   :  { %29 = vperm.xlu0 %170, %v25_v4  }
  0x7d   :  { %v49_v7 = vpop.permute.xlu1 %48 }
  0x7e   :  { %v35_v8 = vpop.permute.xlu0 %34 }
  0x7f   :  { %v38_v9 = vmul.f32 %v35_v8, %v24_v6 }
  0x81   :  { %v52_v11 = vadd.f32 %v49_v7, %v38_v9  ;;  %v44_v15 = vpop.permute.xlu1 %43 }
  0x82   :  { %v30_v12 = vpop.permute.xlu0 %29 }
  0x83   :  { %v37_v13 = vmul.f32 %v30_v12, %v23_v10  ;;  %v54_v14 = vmax.f32 %v52_v11, 0.0 }
  0x85   :  { %v51_v16 = vadd.f32 %v44_v15, %v37_v13  ;;  %162 = vmatprep.subr.mxu0 %v54_v14 }
  0x86   :  { %163 = vmatpush3.msra.mxu0 %v54_v14 }
  0x87   :  { %v53_v17 = vmax.f32 %v51_v16, 0.0 }
  0x89   :  { %164 = vmatprep.subr.mxu0 %v53_v17 }
  0x8a   :  { %165 = vmatpush3.msra.mxu0 %v53_v17 }
  0x8b   :  { %167 = vmatmul.mubr.msk.f32.vlgmr.msra.gmra.mxu0 %vm59_vm0, %v58_v18 }
 0x14b   :  { %v168_v19 = vpop.f32.mrf.mxu0 }
 0x14c   :  { %151 = vst [vmem:[%s234_s4 + $0x8] sm:$0xff] %v168_v19 }
 0x14d   :  { %v132_v20 = vpop.f32.mrf.mxu0 }
 0x14e   :  { %150 = vst [vmem:[%s234_s4] sm:$0xff] %v132_v20 }

// kernel: tile.23
= control target key start
LH: loop header
LB: loop body
LE: loop exit
PB: predicated region body
PF: predicated region fallthrough
CT: control target
= control target key end

     0   :  { %s28_s0 = inlined_call_operand.vmem [shape: f32[16], index: 0, kind: input, shape index: {}]   ;;  %s29_s1 = inlined_call_operand.vmem [shape: f32[9,16], index: 1, kind: output, shape index: {}]  }
   0x1   :  { %v4_v0 = vld [vmem:[%s28_s0] ss:$0 sm:$0xff] }
   0x2   :  { %5 = vst [vmem:[%s29_s1] sm:$0xff] %v4_v0  ;;  %8 = vst [vmem:[%s29_s1 + $0x8] sm:$0xff] %v4_v0 }

// kernel: tile.0
= control target key start
LH: loop header
LB: loop body
LE: loop exit
PB: predicated region body
PF: predicated region fallthrough
CT: control target
= control target key end

     0   :  { %vm3_vm0 = vcmask 7168   ;;  %s405_s8 = smov 126   ;;  %s406_s9 = smov 127   ;;  %s822_s0 = inlined_call_operand.vmem [shape: f32[9,16], index: 0, kind: input, shape index: {}]   ;;  %s823_s1 = inlined_call_operand.vmem [shape: f32[144,1], index: 1, kind: output, shape index: {}]  }
   0x1   :  { %v433_v0 = vld [vmem:[%s822_s0] sm:$0xff]   ;;  %v310_v1 = vld [vmem:[%s822_s0 + $0x8] sm:$0x1]   ;;  %s407_s24 = smov 125   ;;  %s408_s27 = smov 124  }
   0x2   :  { %33 = vrot.lane.b32.xlu1 %v433_v0, %s405_s8  ;;  %14 = vrot.lane.b32.xlu0 %v433_v0, %s406_s9  ;;  %4 = vst.msk [vmem:[%s823_s1] ss:$16 sm:$0x3] %vm3_vm0, %v433_v0   ;;  %5 = vst.msk [vmem:[%s823_s1] ss:$16 sm:$0xc] %vm3_vm0, %v433_v0  }
   0x3   :  { %6 = vst.msk [vmem:[%s823_s1] ss:$16 sm:$0x30] %vm3_vm0, %v433_v0   ;;  %7 = vst.msk [vmem:[%s823_s1] ss:$16 sm:$0xc0] %vm3_vm0, %v433_v0  }
   0x4   :  { %v304_v2 = vld [vmem:[%s822_s0 + $0x8] sm:$0x1]   ;;  %s409_s30 = smov 123   ;;  %s410_s4 = smov 122  }
   0x5   :  { %v316_v3 = vld [vmem:[%s822_s0 + $0x8] sm:$0x1]   ;;  %s411_s7 = smov 121   ;;  %s412_s10 = smov 120  }
   0x6   :  { %46 = vrot.lane.b32.xlu1 %v310_v1, %s405_s8  ;;  %27 = vrot.lane.b32.xlu0 %v304_v2, %s406_s9  ;;  %v322_v4 = vld [vmem:[%s822_s0 + $0x8] sm:$0x1]   ;;  %s413_s13 = smov 119   ;;  %s414_s16 = smov 118  }
   0x7   :  { %v328_v5 = vld [vmem:[%s822_s0 + $0x8] sm:$0x1]   ;;  %s415_s19 = smov 117   ;;  %s416_s26 = smov 116  }
   0x8   :  { %v334_v6 = vld [vmem:[%s822_s0 + $0x8] sm:$0x1]   ;;  %s417_s29 = smov 115   ;;  %s418_s3 = smov 114  }
   0x9   :  { %v340_v7 = vld [vmem:[%s822_s0 + $0x8] sm:$0x1]  }
   0xa   :  { %65 = vrot.lane.b32.xlu1 %v316_v3, %s407_s24  ;;  %52 = vrot.lane.b32.xlu0 %v433_v0, %s407_s24  ;;  %v346_v8 = vld [vmem:[%s822_s0 + $0x8] sm:$0x1]  }
   0xb   :  { %v352_v9 = vld [vmem:[%s822_s0 + $0x8] sm:$0x1]  }
   0xc   :  { %v358_v10 = vld [vmem:[%s822_s0 + $0x8] sm:$0x1]  }
   0xd   :  { %v364_v11 = vld [vmem:[%s822_s0 + $0x8] sm:$0x1]  }
   0xe   :  { %84 = vrot.lane.b32.xlu1 %v322_v4, %s408_s27  ;;  %71 = vrot.lane.b32.xlu0 %v433_v0, %s408_s27  ;;  %v370_v12 = vld [vmem:[%s822_s0 + $0x8] sm:$0x1]  }
   0xf   :  { %v298_v13 = vld [vmem:[%s822_s0 + $0x8] sm:$0x1]  }
  0x10   :  { %299 = vst.msk [vmem:[%s823_s1 + $0x80] sm:$0x1] %vm3_vm0, %v298_v13   ;;  %v376_v14 = vld [vmem:[%s822_s0 + $0x8] sm:$0x1]  }
  0x11   :  { %v382_v15 = vld [vmem:[%s822_s0 + $0x8] sm:$0x1]  }
  0x12   :  { %103 = vrot.lane.b32.xlu1 %v328_v5, %s409_s30  ;;  %90 = vrot.lane.b32.xlu0 %v433_v0, %s409_s30  ;;  %v388_v16 = vld [vmem:[%s822_s0 + $0x8] sm:$0x1]   ;;  %s419_s0 = smov 113  }
  0x16   :  { %122 = vrot.lane.b32.xlu1 %v334_v6, %s410_s4  ;;  %109 = vrot.lane.b32.xlu0 %v433_v0, %s410_s4 }
  0x1a   :  { %141 = vrot.lane.b32.xlu1 %v340_v7, %s411_s7  ;;  %128 = vrot.lane.b32.xlu0 %v433_v0, %s411_s7 }
  0x1e   :  { %160 = vrot.lane.b32.xlu1 %v346_v8, %s412_s10  ;;  %147 = vrot.lane.b32.xlu0 %v433_v0, %s412_s10 }
  0x22   :  { %179 = vrot.lane.b32.xlu1 %v352_v9, %s413_s13  ;;  %166 = vrot.lane.b32.xlu0 %v433_v0, %s413_s13 }
  0x26   :  { %198 = vrot.lane.b32.xlu1 %v358_v10, %s414_s16  ;;  %185 = vrot.lane.b32.xlu0 %v433_v0, %s414_s16 }
  0x2a   :  { %217 = vrot.lane.b32.xlu1 %v364_v11, %s415_s19  ;;  %204 = vrot.lane.b32.xlu0 %v433_v0, %s415_s19 }
  0x2e   :  { %236 = vrot.lane.b32.xlu1 %v370_v12, %s416_s26  ;;  %223 = vrot.lane.b32.xlu0 %v433_v0, %s416_s26 }
  0x32   :  { %255 = vrot.lane.b32.xlu1 %v376_v14, %s417_s29  ;;  %242 = vrot.lane.b32.xlu0 %v433_v0, %s417_s29 }
  0x36   :  { %274 = vrot.lane.b32.xlu1 %v382_v15, %s418_s3  ;;  %261 = vrot.lane.b32.xlu0 %v433_v0, %s418_s3 }
  0x3a   :  { %293 = vrot.lane.b32.xlu1 %v388_v16, %s419_s0  ;;  %280 = vrot.lane.b32.xlu0 %v433_v0, %s419_s0 }
  0x74   :  { %v34_v17 = vpop.permute.xlu1 %33   ;;  %v15_v18 = vpop.permute.xlu0 %14  }
  0x75   :  { %306 = vst.msk [vmem:[%s823_s1 + $0x2] ss:$16 sm:$0x3] %vm3_vm0, %v34_v17   ;;  %307 = vst.msk [vmem:[%s823_s1 + $0x2] ss:$16 sm:$0xc] %vm3_vm0, %v34_v17  }
  0x76   :  { %308 = vst.msk [vmem:[%s823_s1 + $0x2] ss:$16 sm:$0x30] %vm3_vm0, %v34_v17   ;;  %309 = vst.msk [vmem:[%s823_s1 + $0x2] ss:$16 sm:$0xc0] %vm3_vm0, %v34_v17  }
  0x77   :  { %300 = vst.msk [vmem:[%s823_s1 + $0x1] ss:$16 sm:$0x3] %vm3_vm0, %v15_v18   ;;  %301 = vst.msk [vmem:[%s823_s1 + $0x1] ss:$16 sm:$0xc] %vm3_vm0, %v15_v18  }
  0x78   :  { %302 = vst.msk [vmem:[%s823_s1 + $0x1] ss:$16 sm:$0x30] %vm3_vm0, %v15_v18   ;;  %303 = vst.msk [vmem:[%s823_s1 + $0x1] ss:$16 sm:$0xc0] %vm3_vm0, %v15_v18   ;;  %v47_v19 = vpop.permute.xlu1 %46   ;;  %v28_v20 = vpop.permute.xlu0 %27  }
  0x79   :  { %311 = vst.msk [vmem:[%s823_s1 + $0x82] sm:$0x1] %vm3_vm0, %v47_v19   ;;  %305 = vst.msk [vmem:[%s823_s1 + $0x81] sm:$0x1] %vm3_vm0, %v28_v20  }
  0x7c   :  { %v66_v21 = vpop.permute.xlu1 %65   ;;  %v53_v22 = vpop.permute.xlu0 %52  }
  0x7d   :  { %317 = vst.msk [vmem:[%s823_s1 + $0x83] sm:$0x1] %vm3_vm0, %v66_v21   ;;  %312 = vst.msk [vmem:[%s823_s1 + $0x3] ss:$16 sm:$0x3] %vm3_vm0, %v53_v22  }
  0x7e   :  { %313 = vst.msk [vmem:[%s823_s1 + $0x3] ss:$16 sm:$0xc] %vm3_vm0, %v53_v22   ;;  %314 = vst.msk [vmem:[%s823_s1 + $0x3] ss:$16 sm:$0x30] %vm3_vm0, %v53_v22  }
  0x7f   :  { %315 = vst.msk [vmem:[%s823_s1 + $0x3] ss:$16 sm:$0xc0] %vm3_vm0, %v53_v22  }
  0x80   :  { %v85_v23 = vpop.permute.xlu1 %84   ;;  %v72_v24 = vpop.permute.xlu0 %71  }
  0x81   :  { %323 = vst.msk [vmem:[%s823_s1 + $0x84] sm:$0x1] %vm3_vm0, %v85_v23   ;;  %318 = vst.msk [vmem:[%s823_s1 + $0x4] ss:$16 sm:$0x3] %vm3_vm0, %v72_v24  }
  0x82   :  { %319 = vst.msk [vmem:[%s823_s1 + $0x4] ss:$16 sm:$0xc] %vm3_vm0, %v72_v24   ;;  %320 = vst.msk [vmem:[%s823_s1 + $0x4] ss:$16 sm:$0x30] %vm3_vm0, %v72_v24  }
  0x83   :  { %321 = vst.msk [vmem:[%s823_s1 + $0x4] ss:$16 sm:$0xc0] %vm3_vm0, %v72_v24  }
  0x84   :  { %v104_v25 = vpop.permute.xlu1 %103   ;;  %v91_v26 = vpop.permute.xlu0 %90  }
  0x85   :  { %329 = vst.msk [vmem:[%s823_s1 + $0x85] sm:$0x1] %vm3_vm0, %v104_v25   ;;  %324 = vst.msk [vmem:[%s823_s1 + $0x5] ss:$16 sm:$0x3] %vm3_vm0, %v91_v26  }
  0x86   :  { %325 = vst.msk [vmem:[%s823_s1 + $0x5] ss:$16 sm:$0xc] %vm3_vm0, %v91_v26   ;;  %326 = vst.msk [vmem:[%s823_s1 + $0x5] ss:$16 sm:$0x30] %vm3_vm0, %v91_v26  }
  0x87   :  { %327 = vst.msk [vmem:[%s823_s1 + $0x5] ss:$16 sm:$0xc0] %vm3_vm0, %v91_v26  }
  0x88   :  { %v123_v27 = vpop.permute.xlu1 %122   ;;  %v110_v28 = vpop.permute.xlu0 %109  }
  0x89   :  { %335 = vst.msk [vmem:[%s823_s1 + $0x86] sm:$0x1] %vm3_vm0, %v123_v27   ;;  %330 = vst.msk [vmem:[%s823_s1 + $0x6] ss:$16 sm:$0x3] %vm3_vm0, %v110_v28  }
  0x8a   :  { %331 = vst.msk [vmem:[%s823_s1 + $0x6] ss:$16 sm:$0xc] %vm3_vm0, %v110_v28   ;;  %332 = vst.msk [vmem:[%s823_s1 + $0x6] ss:$16 sm:$0x30] %vm3_vm0, %v110_v28  }
  0x8b   :  { %333 = vst.msk [vmem:[%s823_s1 + $0x6] ss:$16 sm:$0xc0] %vm3_vm0, %v110_v28  }
  0x8c   :  { %v142_v29 = vpop.permute.xlu1 %141   ;;  %v129_v30 = vpop.permute.xlu0 %128  }
  0x8d   :  { %341 = vst.msk [vmem:[%s823_s1 + $0x87] sm:$0x1] %vm3_vm0, %v142_v29   ;;  %336 = vst.msk [vmem:[%s823_s1 + $0x7] ss:$16 sm:$0x3] %vm3_vm0, %v129_v30  }
  0x8e   :  { %337 = vst.msk [vmem:[%s823_s1 + $0x7] ss:$16 sm:$0xc] %vm3_vm0, %v129_v30   ;;  %338 = vst.msk [vmem:[%s823_s1 + $0x7] ss:$16 sm:$0x30] %vm3_vm0, %v129_v30  }
  0x8f   :  { %339 = vst.msk [vmem:[%s823_s1 + $0x7] ss:$16 sm:$0xc0] %vm3_vm0, %v129_v30  }
  0x90   :  { %v161_v31 = vpop.permute.xlu1 %160   ;;  %v148_v32 = vpop.permute.xlu0 %147  }
  0x91   :  { %347 = vst.msk [vmem:[%s823_s1 + $0x88] sm:$0x1] %vm3_vm0, %v161_v31   ;;  %342 = vst.msk [vmem:[%s823_s1 + $0x8] ss:$16 sm:$0x3] %vm3_vm0, %v148_v32  }
  0x92   :  { %343 = vst.msk [vmem:[%s823_s1 + $0x8] ss:$16 sm:$0xc] %vm3_vm0, %v148_v32   ;;  %344 = vst.msk [vmem:[%s823_s1 + $0x8] ss:$16 sm:$0x30] %vm3_vm0, %v148_v32  }
  0x93   :  { %345 = vst.msk [vmem:[%s823_s1 + $0x8] ss:$16 sm:$0xc0] %vm3_vm0, %v148_v32  }
  0x94   :  { %v180_v33 = vpop.permute.xlu1 %179   ;;  %v167_v34 = vpop.permute.xlu0 %166  }
  0x95   :  { %353 = vst.msk [vmem:[%s823_s1 + $0x89] sm:$0x1] %vm3_vm0, %v180_v33   ;;  %348 = vst.msk [vmem:[%s823_s1 + $0x9] ss:$16 sm:$0x3] %vm3_vm0, %v167_v34  }
  0x96   :  { %349 = vst.msk [vmem:[%s823_s1 + $0x9] ss:$16 sm:$0xc] %vm3_vm0, %v167_v34   ;;  %350 = vst.msk [vmem:[%s823_s1 + $0x9] ss:$16 sm:$0x30] %vm3_vm0, %v167_v34  }
  0x97   :  { %351 = vst.msk [vmem:[%s823_s1 + $0x9] ss:$16 sm:$0xc0] %vm3_vm0, %v167_v34  }
  0x98   :  { %v199_v35 = vpop.permute.xlu1 %198   ;;  %v186_v36 = vpop.permute.xlu0 %185  }
  0x99   :  { %359 = vst.msk [vmem:[%s823_s1 + $0x8a] sm:$0x1] %vm3_vm0, %v199_v35   ;;  %354 = vst.msk [vmem:[%s823_s1 + $0xa] ss:$16 sm:$0x3] %vm3_vm0, %v186_v36  }
  0x9a   :  { %355 = vst.msk [vmem:[%s823_s1 + $0xa] ss:$16 sm:$0xc] %vm3_vm0, %v186_v36   ;;  %356 = vst.msk [vmem:[%s823_s1 + $0xa] ss:$16 sm:$0x30] %vm3_vm0, %v186_v36  }
  0x9b   :  { %357 = vst.msk [vmem:[%s823_s1 + $0xa] ss:$16 sm:$0xc0] %vm3_vm0, %v186_v36  }
  0x9c   :  { %v218_v37 = vpop.permute.xlu1 %217   ;;  %v205_v38 = vpop.permute.xlu0 %204  }
  0x9d   :  { %365 = vst.msk [vmem:[%s823_s1 + $0x8b] sm:$0x1] %vm3_vm0, %v218_v37   ;;  %360 = vst.msk [vmem:[%s823_s1 + $0xb] ss:$16 sm:$0x3] %vm3_vm0, %v205_v38  }
  0x9e   :  { %361 = vst.msk [vmem:[%s823_s1 + $0xb] ss:$16 sm:$0xc] %vm3_vm0, %v205_v38   ;;  %362 = vst.msk [vmem:[%s823_s1 + $0xb] ss:$16 sm:$0x30] %vm3_vm0, %v205_v38  }
  0x9f   :  { %363 = vst.msk [vmem:[%s823_s1 + $0xb] ss:$16 sm:$0xc0] %vm3_vm0, %v205_v38  }
  0xa0   :  { %v237_v39 = vpop.permute.xlu1 %236   ;;  %v224_v40 = vpop.permute.xlu0 %223  }
  0xa1   :  { %371 = vst.msk [vmem:[%s823_s1 + $0x8c] sm:$0x1] %vm3_vm0, %v237_v39   ;;  %366 = vst.msk [vmem:[%s823_s1 + $0xc] ss:$16 sm:$0x3] %vm3_vm0, %v224_v40  }
  0xa2   :  { %367 = vst.msk [vmem:[%s823_s1 + $0xc] ss:$16 sm:$0xc] %vm3_vm0, %v224_v40   ;;  %368 = vst.msk [vmem:[%s823_s1 + $0xc] ss:$16 sm:$0x30] %vm3_vm0, %v224_v40  }
  0xa3   :  { %369 = vst.msk [vmem:[%s823_s1 + $0xc] ss:$16 sm:$0xc0] %vm3_vm0, %v224_v40  }
  0xa4   :  { %v256_v41 = vpop.permute.xlu1 %255   ;;  %v243_v42 = vpop.permute.xlu0 %242  }
  0xa5   :  { %377 = vst.msk [vmem:[%s823_s1 + $0x8d] sm:$0x1] %vm3_vm0, %v256_v41   ;;  %372 = vst.msk [vmem:[%s823_s1 + $0xd] ss:$16 sm:$0x3] %vm3_vm0, %v243_v42  }
  0xa6   :  { %373 = vst.msk [vmem:[%s823_s1 + $0xd] ss:$16 sm:$0xc] %vm3_vm0, %v243_v42   ;;  %374 = vst.msk [vmem:[%s823_s1 + $0xd] ss:$16 sm:$0x30] %vm3_vm0, %v243_v42  }
  0xa7   :  { %375 = vst.msk [vmem:[%s823_s1 + $0xd] ss:$16 sm:$0xc0] %vm3_vm0, %v243_v42  }
  0xa8   :  { %v275_v43 = vpop.permute.xlu1 %274   ;;  %v262_v44 = vpop.permute.xlu0 %261  }
  0xa9   :  { %383 = vst.msk [vmem:[%s823_s1 + $0x8e] sm:$0x1] %vm3_vm0, %v275_v43   ;;  %378 = vst.msk [vmem:[%s823_s1 + $0xe] ss:$16 sm:$0x3] %vm3_vm0, %v262_v44  }
  0xaa   :  { %379 = vst.msk [vmem:[%s823_s1 + $0xe] ss:$16 sm:$0xc] %vm3_vm0, %v262_v44   ;;  %380 = vst.msk [vmem:[%s823_s1 + $0xe] ss:$16 sm:$0x30] %vm3_vm0, %v262_v44  }
  0xab   :  { %381 = vst.msk [vmem:[%s823_s1 + $0xe] ss:$16 sm:$0xc0] %vm3_vm0, %v262_v44  }
  0xac   :  { %v294_v45 = vpop.permute.xlu1 %293   ;;  %v281_v46 = vpop.permute.xlu0 %280  }
  0xad   :  { %389 = vst.msk [vmem:[%s823_s1 + $0x8f] sm:$0x1] %vm3_vm0, %v294_v45   ;;  %384 = vst.msk [vmem:[%s823_s1 + $0xf] ss:$16 sm:$0x3] %vm3_vm0, %v281_v46  }
  0xae   :  { %385 = vst.msk [vmem:[%s823_s1 + $0xf] ss:$16 sm:$0xc] %vm3_vm0, %v281_v46   ;;  %386 = vst.msk [vmem:[%s823_s1 + $0xf] ss:$16 sm:$0x30] %vm3_vm0, %v281_v46  }
  0xaf   :  { %387 = vst.msk [vmem:[%s823_s1 + $0xf] ss:$16 sm:$0xc0] %vm3_vm0, %v281_v46  }

// kernel: densenet_forward.16
= control target key start
LH: loop header
LB: loop body
LE: loop exit
PB: predicated region body
PF: predicated region fallthrough
CT: control target
= control target key end

     0   :  { %v403_v0 = vmov 0   ;;  %v404_v5 = vmov 0.0   ;;  %vm313_vm0 = vcmask 130048   ;;  %s619_s3 = inlined_call_operand.vmem [shape: f32[144,1], index: 3, kind: input, shape index: {}]   ;;  %s620_s2 = inlined_call_operand.vmem [shape: f32[144,1], index: 2, kind: input, shape index: {}]   ;;  %s621_s0 = inlined_call_operand.vmem [shape: f32[8,144], index: 0, kind: input, shape index: {}]   ;;  %s622_s1 = inlined_call_operand.vmem [shape: f32[144,128], index: 1, kind: input, shape index: {}]   ;;  %s623_s4 = inlined_call_operand.vmem [shape: f32[8,128], index: 4, kind: output, shape index: {}]  }
   0x1   :  { %402 = vset.pattern.permute.xlu1 %v403_v0  ;;  %401 = vset.pattern.permute.xlu0 %v403_v0  ;;  %v181_v1 = vld [vmem:[%s619_s3 + $0x78] sm:$0xff]  ;;  %v54_v3 = vld [vmem:[%s620_s2 + $0x70] sm:$0xff]  ;;  %v53_v4 = vld [vmem:[%s620_s2 + $0x68] sm:$0xff] }
   0x2   :  { %v55_v2 = vld [vmem:[%s620_s2 + $0x78] sm:$0xff]  ;;  %261 = vperm.xlu1 %402, %v181_v1   ;;  %317 = vmatprep.subr.mxu0 %v404_v5  ;;  %v180_v6 = vld [vmem:[%s619_s3 + $0x70] sm:$0xff]  ;;  %v52_v7 = vld [vmem:[%s620_s2 + $0x60] sm:$0xff] }
   0x3   :  { %135 = vperm.xlu0 %401, %v55_v2   ;;  %v179_v8 = vld [vmem:[%s619_s3 + $0x68] sm:$0xff]  ;;  %v51_v9 = vld [vmem:[%s620_s2 + $0x58] sm:$0xff]  ;;  %v178_v10 = vld [vmem:[%s619_s3 + $0x60] sm:$0xff] }
   0x4   :  { %v50_v11 = vld [vmem:[%s620_s2 + $0x50] sm:$0xff]  ;;  %v177_v12 = vld [vmem:[%s619_s3 + $0x58] sm:$0xff]  ;;  %v49_v13 = vld [vmem:[%s620_s2 + $0x48] sm:$0xff] }
   0x5   :  { %v176_v14 = vld [vmem:[%s619_s3 + $0x50] sm:$0xff]  ;;  %v48_v15 = vld [vmem:[%s620_s2 + $0x40] sm:$0xff]  ;;  %v175_v16 = vld [vmem:[%s619_s3 + $0x48] sm:$0xff] }
   0x6   :  { %125 = vperm.xlu1 %402, %v53_v4   ;;  %v47_v17 = vld [vmem:[%s620_s2 + $0x38] sm:$0xff]  ;;  %v174_v18 = vld [vmem:[%s619_s3 + $0x40] sm:$0xff]  ;;  %v46_v19 = vld [vmem:[%s620_s2 + $0x30] sm:$0xff] }
   0x7   :  { %130 = vperm.xlu0 %401, %v54_v3   ;;  %v173_v20 = vld [vmem:[%s619_s3 + $0x38] sm:$0xff]  ;;  %v45_v21 = vld [vmem:[%s620_s2 + $0x28] sm:$0xff]  ;;  %v172_v22 = vld [vmem:[%s619_s3 + $0x30] sm:$0xff] }
   0x8   :  { %v44_v23 = vld [vmem:[%s620_s2 + $0x20] sm:$0xff]  ;;  %v171_v24 = vld [vmem:[%s619_s3 + $0x28] sm:$0xff]  ;;  %v43_v25 = vld [vmem:[%s620_s2 + $0x18] sm:$0xff] }
   0x9   :  { %v170_v26 = vld [vmem:[%s619_s3 + $0x20] sm:$0xff]  ;;  %v42_v27 = vld [vmem:[%s620_s2 + $0x10] sm:$0xff]  ;;  %v169_v28 = vld [vmem:[%s619_s3 + $0x18] sm:$0xff] }
   0xa   :  { %120 = vperm.xlu1 %402, %v52_v7   ;;  %v41_v29 = vld [vmem:[%s620_s2 + $0x8] sm:$0xff]  ;;  %v168_v30 = vld [vmem:[%s619_s3 + $0x10] sm:$0xff]  ;;  %v40_v31 = vld [vmem:[%s620_s2] sm:$0xff] }
   0xb   :  { %256 = vperm.xlu0 %401, %v180_v6   ;;  %v167_v32 = vld [vmem:[%s619_s3 + $0x8] sm:$0xff]  ;;  %v166_v34 = vld [vmem:[%s619_s3] sm:$0xff]  ;;  %v37_v39 = vld [vmem:[%s622_s1 + $0x78] sm:$0xff] }
   0xc   :  { %v57_v33 = vld [vmem:[%s620_s2 + $0x88] sm:$0xff]  ;;  %v56_v35 = vld [vmem:[%s620_s2 + $0x80] sm:$0xff]  ;;  %v36_v45 = vld [vmem:[%s622_s1 + $0x70] sm:$0xff] }
   0xd   :  { %v183_v36 = vld [vmem:[%s619_s3 + $0x88] sm:$0xff]  ;;  %v182_v37 = vld [vmem:[%s619_s3 + $0x80] sm:$0xff]  ;;  %v33_v61 = vld [vmem:[%s622_s1 + $0x58] sm:$0xff] }
   0xe   :  { %115 = vperm.xlu1 %402, %v51_v9   ;;  %v312_v38 = vld [vmem:[%s621_s0 + $0x8] sm:$0xff]  ;;  %v34_v55 = vld [vmem:[%s622_s1 + $0x60] sm:$0xff]  ;;  %v32_v3 = vld [vmem:[%s622_s1 + $0x50] sm:$0xff] }
   0xf   :  { %251 = vperm.xlu0 %401, %v179_v8   ;;  %398 = vmatprep.mubr.msk.f32.mxu0 %vm313_vm0, %v312_v38  ;;  %v35_v49 = vld [vmem:[%s622_s1 + $0x68] sm:$0xff] }
  0x12   :  { %110 = vperm.xlu1 %402, %v50_v11  }
  0x13   :  { %246 = vperm.xlu0 %401, %v178_v10   ;;  %v31_v10 = vld [vmem:[%s622_s1 + $0x48] sm:$0xff] }
  0x16   :  { %105 = vperm.xlu1 %402, %v49_v13  }
  0x17   :  { %241 = vperm.xlu0 %401, %v177_v12  }
  0x1a   :  { %100 = vperm.xlu1 %402, %v48_v15  }
  0x1b   :  { %236 = vperm.xlu0 %401, %v176_v14  }
  0x1e   :  { %95 = vperm.xlu1 %402, %v47_v17  }
  0x1f   :  { %231 = vperm.xlu0 %401, %v175_v16   ;;  %v30_v16 = vld [vmem:[%s622_s1 + $0x40] sm:$0xff] }
  0x22   :  { %90 = vperm.xlu1 %402, %v46_v19  }
  0x23   :  { %226 = vperm.xlu0 %401, %v174_v18  }
  0x26   :  { %85 = vperm.xlu1 %402, %v45_v21  }
  0x27   :  { %221 = vperm.xlu0 %401, %v173_v20  }
  0x2a   :  { %80 = vperm.xlu1 %402, %v44_v23  }
  0x2b   :  { %216 = vperm.xlu0 %401, %v172_v22   ;;  %v29_v22 = vld [vmem:[%s622_s1 + $0x38] sm:$0xff] }
  0x2e   :  { %75 = vperm.xlu1 %402, %v43_v25  }
  0x2f   :  { %211 = vperm.xlu0 %401, %v171_v24  }
  0x32   :  { %70 = vperm.xlu1 %402, %v42_v27  }
  0x33   :  { %206 = vperm.xlu0 %401, %v170_v26  }
  0x36   :  { %65 = vperm.xlu1 %402, %v41_v29  }
  0x37   :  { %201 = vperm.xlu0 %401, %v169_v28   ;;  %v28_v28 = vld [vmem:[%s622_s1 + $0x30] sm:$0xff] }
  0x3a   :  { %60 = vperm.xlu1 %402, %v40_v31  }
  0x3b   :  { %196 = vperm.xlu0 %401, %v168_v30  }
  0x3e   :  { %145 = vperm.xlu1 %402, %v57_v33  }
  0x3f   :  { %191 = vperm.xlu0 %401, %v167_v32  }
  0x42   :  { %140 = vperm.xlu1 %402, %v56_v35  }
  0x43   :  { %186 = vperm.xlu0 %401, %v166_v34   ;;  %v27_v34 = vld [vmem:[%s622_s1 + $0x28] sm:$0xff] }
  0x46   :  { %266 = vperm.xlu1 %402, %v182_v37  }
  0x47   :  { %271 = vperm.xlu0 %401, %v183_v36  }
  0x7d   :  { %v262_v40 = vpop.permute.xlu1 %261 }
  0x7e   :  { %v136_v41 = vpop.permute.xlu0 %135 }
  0x7f   :  { %v163_v42 = vmul.f32 %v136_v41, %v37_v39 }
  0x81   :  { %v289_v43 = vadd.f32 %v262_v40, %v163_v42  ;;  %v126_v46 = vpop.permute.xlu1 %125  ;;  %v26_v40 = vld [vmem:[%s622_s1 + $0x20] sm:$0xff] }
  0x82   :  { %v131_v44 = vpop.permute.xlu0 %130  ;;  %v161_v53 = vmul.f32 %v126_v46, %v35_v49  ;;  %v25_v46 = vld [vmem:[%s622_s1 + $0x18] sm:$0xff] }
  0x83   :  { %v307_v47 = vmax.f32 %v289_v43, 0.0  ;;  %v162_v48 = vmul.f32 %v131_v44, %v36_v45 }
  0x85   :  { %318 = vmatpush1.msra.mxu0 %v307_v47  ;;  %v121_v51 = vpop.permute.xlu1 %120 }
  0x86   :  { %v257_v50 = vpop.permute.xlu0 %256  ;;  %319 = vmatprep.subr.mxu0 %v404_v5  ;;  %v160_v59 = vmul.f32 %v121_v51, %v34_v55 }
  0x87   :  { %v288_v52 = vadd.f32 %v257_v50, %v162_v48 }
  0x89   :  { %v306_v54 = vmax.f32 %v288_v52, 0.0  ;;  %v116_v57 = vpop.permute.xlu1 %115  ;;  %v24_v52 = vld [vmem:[%s622_s1 + $0x10] sm:$0xff] }
  0x8a   :  { %v252_v56 = vpop.permute.xlu0 %251  ;;  %v159_v1 = vmul.f32 %v116_v57, %v33_v61 }
  0x8b   :  { %v287_v58 = vadd.f32 %v252_v56, %v161_v53  ;;  %320 = vmatpush1.msra.mxu0 %v306_v54 }
  0x8c   :  { %321 = vmatprep.subr.mxu0 %v404_v5 }
  0x8d   :  { %v305_v60 = vmax.f32 %v287_v58, 0.0  ;;  %v111_v63 = vpop.permute.xlu1 %110  ;;  %v23_v58 = vld [vmem:[%s622_s1 + $0x8] sm:$0xff] }
  0x8e   :  { %v247_v62 = vpop.permute.xlu0 %246  ;;  %v158_v8 = vmul.f32 %v111_v63, %v32_v3 }
  0x8f   :  { %v286_v0 = vadd.f32 %v247_v62, %v160_v59  ;;  %322 = vmatpush1.msra.mxu0 %v305_v60 }
  0x90   :  { %323 = vmatprep.subr.mxu0 %v404_v5 }
  0x91   :  { %v304_v2 = vmax.f32 %v286_v0, 0.0  ;;  %v106_v6 = vpop.permute.xlu1 %105  ;;  %v22_v0 = vld [vmem:[%s622_s1] sm:$0xff] }
  0x92   :  { %v242_v4 = vpop.permute.xlu0 %241  ;;  %v157_v14 = vmul.f32 %v106_v6, %v31_v10  ;;  %v38_v10 = vld [vmem:[%s622_s1 + $0x80] sm:$0xff] }
  0x93   :  { %v285_v7 = vadd.f32 %v242_v4, %v159_v1  ;;  %324 = vmatpush1.msra.mxu0 %v304_v2 }
  0x94   :  { %325 = vmatprep.subr.mxu0 %v404_v5 }
  0x95   :  { %v303_v9 = vmax.f32 %v285_v7, 0.0  ;;  %v101_v12 = vpop.permute.xlu1 %100  ;;  %v39_v7 = vld [vmem:[%s622_s1 + $0x88] sm:$0xff] }
  0x96   :  { %v237_v11 = vpop.permute.xlu0 %236  ;;  %v156_v20 = vmul.f32 %v101_v12, %v30_v16 }
  0x97   :  { %v284_v13 = vadd.f32 %v237_v11, %v158_v8  ;;  %326 = vmatpush1.msra.mxu0 %v303_v9 }
  0x98   :  { %327 = vmatprep.subr.mxu0 %v404_v5 }
  0x99   :  { %v302_v15 = vmax.f32 %v284_v13, 0.0  ;;  %v96_v18 = vpop.permute.xlu1 %95 }
  0x9a   :  { %v232_v17 = vpop.permute.xlu0 %231  ;;  %v155_v26 = vmul.f32 %v96_v18, %v29_v22 }
  0x9b   :  { %v283_v19 = vadd.f32 %v232_v17, %v157_v14  ;;  %328 = vmatpush1.msra.mxu0 %v302_v15 }
  0x9c   :  { %329 = vmatprep.subr.mxu0 %v404_v5 }
  0x9d   :  { %v301_v21 = vmax.f32 %v283_v19, 0.0  ;;  %v91_v24 = vpop.permute.xlu1 %90 }
  0x9e   :  { %v227_v23 = vpop.permute.xlu0 %226  ;;  %v154_v32 = vmul.f32 %v91_v24, %v28_v28 }
  0x9f   :  { %v282_v25 = vadd.f32 %v227_v23, %v156_v20  ;;  %330 = vmatpush1.msra.mxu0 %v301_v21  ;;  %v311_v21 = vld [vmem:[%s621_s0] sm:$0xff] }
  0xa0   :  { %331 = vmatprep.subr.mxu0 %v404_v5 }
  0xa1   :  { %v300_v27 = vmax.f32 %v282_v25, 0.0  ;;  %v86_v30 = vpop.permute.xlu1 %85 }
  0xa2   :  { %v222_v29 = vpop.permute.xlu0 %221  ;;  %v153_v38 = vmul.f32 %v86_v30, %v27_v34 }
  0xa3   :  { %v281_v31 = vadd.f32 %v222_v29, %v155_v26  ;;  %332 = vmatpush1.msra.mxu0 %v300_v27 }
  0xa4   :  { %333 = vmatprep.subr.mxu0 %v404_v5 }
  0xa5   :  { %v299_v33 = vmax.f32 %v281_v31, 0.0  ;;  %v81_v36 = vpop.permute.xlu1 %80 }
  0xa6   :  { %v217_v35 = vpop.permute.xlu0 %216  ;;  %v152_v44 = vmul.f32 %v81_v36, %v26_v40 }
  0xa7   :  { %v280_v37 = vadd.f32 %v217_v35, %v154_v32  ;;  %334 = vmatpush1.msra.mxu0 %v299_v33 }
  0xa8   :  { %335 = vmatprep.subr.mxu0 %v404_v5 }
  0xa9   :  { %v298_v39 = vmax.f32 %v280_v37, 0.0  ;;  %v76_v42 = vpop.permute.xlu1 %75 }
  0xaa   :  { %v212_v41 = vpop.permute.xlu0 %211  ;;  %v151_v50 = vmul.f32 %v76_v42, %v25_v46 }
  0xab   :  { %v279_v43 = vadd.f32 %v212_v41, %v153_v38  ;;  %336 = vmatpush1.msra.mxu0 %v298_v39 }
  0xac   :  { %337 = vmatprep.subr.mxu0 %v404_v5 }
  0xad   :  { %v297_v45 = vmax.f32 %v279_v43, 0.0  ;;  %v71_v48 = vpop.permute.xlu1 %70 }
  0xae   :  { %v207_v47 = vpop.permute.xlu0 %206  ;;  %v150_v56 = vmul.f32 %v71_v48, %v24_v52 }
  0xaf   :  { %v278_v49 = vadd.f32 %v207_v47, %v152_v44  ;;  %338 = vmatpush1.msra.mxu0 %v297_v45 }
  0xb0   :  { %339 = vmatprep.subr.mxu0 %v404_v5 }
  0xb1   :  { %v296_v51 = vmax.f32 %v278_v49, 0.0  ;;  %v66_v54 = vpop.permute.xlu1 %65 }
  0xb2   :  { %v202_v53 = vpop.permute.xlu0 %201  ;;  %v149_v62 = vmul.f32 %v66_v54, %v23_v58 }
  0xb3   :  { %v277_v55 = vadd.f32 %v202_v53, %v151_v50  ;;  %340 = vmatpush1.msra.mxu0 %v296_v51 }
  0xb4   :  { %341 = vmatprep.subr.mxu0 %v404_v5 }
  0xb5   :  { %v295_v57 = vmax.f32 %v277_v55, 0.0  ;;  %v61_v60 = vpop.permute.xlu1 %60 }
  0xb6   :  { %v197_v59 = vpop.permute.xlu0 %196  ;;  %v148_v4 = vmul.f32 %v61_v60, %v22_v0 }
  0xb7   :  { %v276_v61 = vadd.f32 %v197_v59, %v150_v56  ;;  %342 = vmatpush1.msra.mxu0 %v295_v57 }
  0xb8   :  { %343 = vmatprep.subr.mxu0 %v404_v5 }
  0xb9   :  { %v294_v63 = vmax.f32 %v276_v61, 0.0  ;;  %v146_v2 = vpop.permute.xlu1 %145 }
  0xba   :  { %v192_v1 = vpop.permute.xlu0 %191  ;;  %v165_v12 = vmul.f32 %v146_v2, %v39_v7 }
  0xbb   :  { %v275_v3 = vadd.f32 %v192_v1, %v149_v62  ;;  %344 = vmatpush1.msra.mxu0 %v294_v63 }
  0xbc   :  { %345 = vmatprep.subr.mxu0 %v404_v5 }
  0xbd   :  { %v293_v6 = vmax.f32 %v275_v3, 0.0  ;;  %v141_v9 = vpop.permute.xlu1 %140 }
  0xbe   :  { %v187_v8 = vpop.permute.xlu0 %186  ;;  %v164_v14 = vmul.f32 %v141_v9, %v38_v10 }
  0xbf   :  { %v274_v11 = vadd.f32 %v187_v8, %v148_v4  ;;  %346 = vmatpush1.msra.mxu0 %v293_v6 }
  0xc0   :  { %347 = vmatprep.subr.mxu0 %v404_v5 }
  0xc1   :  { %v292_v13 = vmax.f32 %v274_v11, 0.0  ;;  %v267_v16 = vpop.permute.xlu1 %266 }
  0xc2   :  { %v272_v15 = vpop.permute.xlu0 %271  ;;  %v290_v18 = vadd.f32 %v267_v16, %v164_v14 }
  0xc3   :  { %v291_v17 = vadd.f32 %v272_v15, %v165_v12  ;;  %348 = vmatpush1.msra.mxu0 %v292_v13 }
  0xc4   :  { %377 = vmatprep.subr.mxu0 %v404_v5  ;;  %v308_v20 = vmax.f32 %v290_v18, 0.0 }
  0xc5   :  { %v309_v19 = vmax.f32 %v291_v17, 0.0 }
  0xc7   :  { %378 = vmatpush2.msra.mxu0 %v309_v19 }
  0xc8   :  { %379 = vmatprep.subr.mxu0 %v404_v5 }
  0xc9   :  { %380 = vmatpush2.msra.mxu0 %v308_v20 }
  0xca   :  { %382 = vmatmul.mubr.f32.vlgmr.msra.gmra.mxu0 %v311_v21 }
 0x18a   :  { %v383_v22 = vpop.f32.mrf.mxu0 }
 0x18b   :  { %393 = vst [vmem:[%s623_s4] sm:$0xff] %v383_v22 }
 0x18c   :  { %v385_v23 = vpop.f32.mrf.mxu0 }

// kernel: densenet_forward.17
= control target key start
LH: loop header
LB: loop body
LE: loop exit
PB: predicated region body
PF: predicated region fallthrough
CT: control target
= control target key end

     0   :  { %v191_v0 = vmov 0   ;;  %vm75_vm0 = vcmask 195584   ;;  %s258_s3 = inlined_call_operand.vmem [shape: f32[24,1], index: 3, kind: input, shape index: {}]   ;;  %s259_s2 = inlined_call_operand.vmem [shape: f32[24,1], index: 2, kind: input, shape index: {}]   ;;  %s260_s0 = inlined_call_operand.vmem [shape: f32[16,24], index: 0, kind: input, shape index: {}]   ;;  %s261_s1 = inlined_call_operand.vmem [shape: f32[24,128], index: 1, kind: input, shape index: {}]   ;;  %s262_s4 = inlined_call_operand.vmem [shape: f32[16,128], index: 4, kind: output, shape index: {}]  }
   0x1   :  { %190 = vset.pattern.permute.xlu1 %v191_v0  ;;  %189 = vset.pattern.permute.xlu0 %v191_v0  ;;  %v49_v1 = vld [vmem:[%s258_s3 + $0x10] sm:$0xff]  ;;  %v27_v3 = vld [vmem:[%s259_s2 + $0x8] sm:$0xff]  ;;  %v26_v4 = vld [vmem:[%s259_s2] sm:$0xff] }
   0x2   :  { %v28_v2 = vld [vmem:[%s259_s2 + $0x10] sm:$0xff]  ;;  %62 = vperm.xlu1 %190, %v49_v1   ;;  %v48_v5 = vld [vmem:[%s258_s3 + $0x8] sm:$0xff]  ;;  %v47_v6 = vld [vmem:[%s258_s3] sm:$0xff] }
   0x3   :  { %41 = vperm.xlu0 %189, %v28_v2   ;;  %v73_v7 = vld [vmem:[%s260_s0] sm:$0xff]  ;;  %v25_v8 = vld [vmem:[%s261_s1 + $0x10] sm:$0xff]  ;;  %v24_v14 = vld [vmem:[%s261_s1 + $0x8] sm:$0xff] }
   0x4   :  { %185 = vmatprep.mubr.msk.f32.mxu0 %vm75_vm0, %v73_v7  ;;  %v23_v16 = vld [vmem:[%s261_s1] sm:$0xff]  ;;  %v74_v26 = vld [vmem:[%s260_s0 + $0x8] sm:$0xff] }
   0x6   :  { %31 = vperm.xlu1 %190, %v26_v4  }
   0x7   :  { %36 = vperm.xlu0 %189, %v27_v3  }
   0xa   :  { %52 = vperm.xlu1 %190, %v47_v6  }
   0xb   :  { %57 = vperm.xlu0 %189, %v48_v5  }
  0x7d   :  { %v63_v9 = vpop.permute.xlu1 %62 }
  0x7e   :  { %v42_v10 = vpop.permute.xlu0 %41 }
  0x7f   :  { %v46_v11 = vmul.f32 %v42_v10, %v25_v8 }
  0x81   :  { %v67_v12 = vadd.f32 %v63_v9, %v46_v11  ;;  %v32_v15 = vpop.permute.xlu1 %31 }
  0x82   :  { %v37_v13 = vpop.permute.xlu0 %36  ;;  %v44_v19 = vmul.f32 %v32_v15, %v23_v16 }
  0x83   :  { %v70_v17 = vmax.f32 %v67_v12, 0.0  ;;  %v45_v18 = vmul.f32 %v37_v13, %v24_v14 }
  0x85   :  { %179 = vmatprep.subr.mxu0 %v70_v17  ;;  %v53_v21 = vpop.permute.xlu1 %52 }
  0x86   :  { %v58_v20 = vpop.permute.xlu0 %57  ;;  %180 = vmatpush3.msra.mxu0 %v70_v17  ;;  %v65_v23 = vadd.f32 %v53_v21, %v44_v19 }
  0x87   :  { %v66_v22 = vadd.f32 %v58_v20, %v45_v18 }
  0x88   :  { %v68_v25 = vmax.f32 %v65_v23, 0.0 }
  0x89   :  { %v69_v24 = vmax.f32 %v66_v22, 0.0 }
  0x8b   :  { %181 = vmatprep.subr.mxu0 %v69_v24 }
  0x8c   :  { %182 = vmatpush3.msra.mxu0 %v69_v24 }
  0x8d   :  { %183 = vmatprep.subr.mxu0 %v68_v25 }
  0x8e   :  { %184 = vmatpush3.msra.mxu0 %v68_v25 }
  0x8f   :  { %186 = vmatmul.mubr.msk.f32.vlgmr.msra.gmra.mxu0 %vm75_vm0, %v74_v26 }
 0x14f   :  { %v187_v27 = vpop.f32.mrf.mxu0 }
 0x150   :  { %167 = vst [vmem:[%s262_s4 + $0x8] sm:$0xff] %v187_v27 }
 0x151   :  { %v148_v28 = vpop.f32.mrf.mxu0 }
 0x152   :  { %166 = vst [vmem:[%s262_s4] sm:$0xff] %v148_v28 }

// kernel: densenet_forward.20
= control target key start
LH: loop header
LB: loop body
LE: loop exit
PB: predicated region body
PF: predicated region fallthrough
CT: control target
= control target key end

     0   :  { %vm25_vm0 = vcmask 261120   ;;  %s182_s1 = inlined_call_operand.vmem [shape: f32[32,128], index: 1, kind: input, shape index: {}]   ;;  %s183_s0 = inlined_call_operand.vmem [shape: f32[16,32], index: 0, kind: input, shape index: {}]   ;;  %s184_s2 = inlined_call_operand.vmem [shape: f32[16,128], index: 2, kind: output, shape index: {}]  }
   0x1   :  { %v20_v0 = vld [vmem:[%s182_s1 + $0x18] sm:$0xff]  ;;  %v19_v1 = vld [vmem:[%s182_s1 + $0x10] sm:$0xff]  ;;  %v23_v2 = vld [vmem:[%s183_s0] sm:$0xff] }
   0x2   :  { %130 = vmatprep.subr.mxu0 %v20_v0  ;;  %v18_v3 = vld [vmem:[%s182_s1 + $0x8] sm:$0xff]  ;;  %138 = vmatprep.mubr.msk.f32.mxu0 %vm25_vm0, %v23_v2  ;;  %v17_v4 = vld [vmem:[%s182_s1] sm:$0xff] }
   0x3   :  { %131 = vmatpush3.msra.mxu0 %v20_v0  ;;  %v24_v5 = vld [vmem:[%s183_s0 + $0x8] sm:$0xff] }
   0x4   :  { %132 = vmatprep.subr.mxu0 %v19_v1 }
   0x5   :  { %133 = vmatpush3.msra.mxu0 %v19_v1 }
   0x6   :  { %134 = vmatprep.subr.mxu0 %v18_v3 }
   0x7   :  { %135 = vmatpush3.msra.mxu0 %v18_v3 }
   0x8   :  { %136 = vmatprep.subr.mxu0 %v17_v4 }
   0x9   :  { %137 = vmatpush3.msra.mxu0 %v17_v4 }
   0xa   :  { %139 = vmatmul.mubr.msk.f32.vlgmr.msra.gmra.mxu0 %vm25_vm0, %v24_v5 }
  0xca   :  { %v140_v6 = vpop.f32.mrf.mxu0 }
  0xcb   :  { %117 = vst [vmem:[%s184_s2 + $0x8] sm:$0xff] %v140_v6 }
  0xcc   :  { %v98_v7 = vpop.f32.mrf.mxu0 }
  0xcd   :  { %116 = vst [vmem:[%s184_s2] sm:$0xff] %v98_v7 }

// kernel: densenet_forward.19
= control target key start
LH: loop header
LB: loop body
LE: loop exit
PB: predicated region body
PF: predicated region fallthrough
CT: control target
= control target key end

     0   :  { %v168_v0 = vmov 0   ;;  %s273_s1 = inlined_call_operand.vmem [shape: f32[32,1], index: 1, kind: input, shape index: {}]   ;;  %s274_s2 = inlined_call_operand.vmem [shape: f32[32,1], index: 2, kind: input, shape index: {}]   ;;  %s275_s0 = inlined_call_operand.vmem [shape: f32[4,32,128], index: 0, kind: input, shape index: {}]   ;;  %s276_s3 = inlined_call_operand.vmem [shape: f32[32,128], index: 3, kind: output, shape index: {}]  }
   0x1   :  { %167 = vset.pattern.permute.xlu1 %v168_v0  ;;  %166 = vset.pattern.permute.xlu0 %v168_v0  ;;  %v16_v1 = vld [vmem:[%s273_s1 + $0x10] sm:$0xff]  ;;  %v14_v2 = vld [vmem:[%s273_s1] sm:$0xff]  ;;  %v17_v3 = vld [vmem:[%s273_s1 + $0x18] sm:$0xff] }
   0x2   :  { %38 = vperm.xlu1 %167, %v16_v1   ;;  %28 = vperm.xlu0 %166, %v14_v2   ;;  %v15_v4 = vld [vmem:[%s273_s1 + $0x8] sm:$0xff]  ;;  %v18_v6 = vld [vmem:[%s274_s2] sm:$0xff]  ;;  %v21_v7 = vld [vmem:[%s274_s2 + $0x18] sm:$0xff] }
   0x3   :  { %v19_v5 = vld [vmem:[%s274_s2 + $0x8] sm:$0xff]  ;;  %v20_v8 = vld [vmem:[%s274_s2 + $0x10] sm:$0xff]  ;;  %v22_v11 = vld [vmem:[%s275_s0] sm:$0xff] }
   0x4   :  { %v153_v12 = vld [vmem:[%s275_s0 + $0x20] sm:$0xff]  ;;  %v23_v15 = vld [vmem:[%s275_s0 + $0x8] sm:$0xff]  ;;  %v24_v17 = vld [vmem:[%s275_s0 + $0x10] sm:$0xff] }
   0x5   :  { %v157_v13 = vld [vmem:[%s275_s0 + $0x40] sm:$0xff]  ;;  %v154_v16 = vld [vmem:[%s275_s0 + $0x28] sm:$0xff]  ;;  %v155_v18 = vld [vmem:[%s275_s0 + $0x30] sm:$0xff] }
   0x6   :  { %43 = vperm.xlu1 %167, %v17_v3   ;;  %33 = vperm.xlu0 %166, %v15_v4   ;;  %v161_v14 = vld [vmem:[%s275_s0 + $0x60] sm:$0xff]  ;;  %v159_v19 = vld [vmem:[%s275_s0 + $0x50] sm:$0xff]  ;;  %v158_v22 = vld [vmem:[%s275_s0 + $0x48] sm:$0xff] }
   0x7   :  { %v162_v23 = vld [vmem:[%s275_s0 + $0x68] sm:$0xff]  ;;  %v25_v24 = vld [vmem:[%s275_s0 + $0x18] sm:$0xff]  ;;  %v163_v30 = vld [vmem:[%s275_s0 + $0x70] sm:$0xff] }
   0x8   :  { %v156_v28 = vld [vmem:[%s275_s0 + $0x38] sm:$0xff] }
   0x9   :  { %v160_v29 = vld [vmem:[%s275_s0 + $0x58] sm:$0xff] }
   0xa   :  { %57 = vperm.xlu1 %167, %v19_v5   ;;  %52 = vperm.xlu0 %166, %v18_v6   ;;  %v164_v44 = vld [vmem:[%s275_s0 + $0x78] sm:$0xff] }
   0xe   :  { %67 = vperm.xlu1 %167, %v21_v7   ;;  %62 = vperm.xlu0 %166, %v20_v8  }
  0x7d   :  { %v39_v9 = vpop.permute.xlu1 %38  ;;  %v29_v10 = vpop.permute.xlu0 %28 }
  0x7e   :  { %v46_v25 = vmul.f32 %v29_v10, %v22_v11  ;;  %v83_v26 = vmul.f32 %v153_v12, %v29_v10  ;;  %v104_v27 = vmul.f32 %v157_v13, %v29_v10  ;;  %v125_v31 = vmul.f32 %v161_v14, %v29_v10 }
  0x7f   :  { %v48_v32 = vmul.f32 %v39_v9, %v24_v17  ;;  %v85_v33 = vmul.f32 %v155_v18, %v39_v9  ;;  %v106_v34 = vmul.f32 %v159_v19, %v39_v9  ;;  %v127_v45 = vmul.f32 %v163_v30, %v39_v9 }
  0x81   :  { %v44_v20 = vpop.permute.xlu1 %43  ;;  %v34_v21 = vpop.permute.xlu0 %33 }
  0x82   :  { %v47_v35 = vmul.f32 %v34_v21, %v23_v15  ;;  %v84_v36 = vmul.f32 %v154_v16, %v34_v21  ;;  %v105_v37 = vmul.f32 %v158_v22, %v34_v21  ;;  %v126_v38 = vmul.f32 %v162_v23, %v34_v21 }
  0x83   :  { %v49_v41 = vmul.f32 %v44_v20, %v25_v24  ;;  %v86_v42 = vmul.f32 %v156_v28, %v44_v20  ;;  %v107_v43 = vmul.f32 %v160_v29, %v44_v20  ;;  %v128_v57 = vmul.f32 %v164_v44, %v44_v20 }
  0x85   :  { %v58_v39 = vpop.permute.xlu1 %57  ;;  %v53_v40 = vpop.permute.xlu0 %52 }
  0x86   :  { %v71_v46 = vadd.f32 %v58_v39, %v47_v35  ;;  %v88_v47 = vadd.f32 %v84_v36, %v58_v39  ;;  %v109_v48 = vadd.f32 %v105_v37, %v58_v39  ;;  %v130_v49 = vadd.f32 %v126_v38, %v58_v39 }
  0x87   :  { %v70_v50 = vadd.f32 %v53_v40, %v46_v25  ;;  %v87_v51 = vadd.f32 %v83_v26, %v53_v40  ;;  %v108_v52 = vadd.f32 %v104_v27, %v53_v40  ;;  %v129_v53 = vadd.f32 %v125_v31, %v53_v40 }
  0x88   :  { %v75_v54 = vmax.f32 %v71_v46, 0.0  ;;  %v92_v55 = vmax.f32 %v88_v47, 0.0  ;;  %v113_v56 = vmax.f32 %v109_v48, 0.0  ;;  %v134_v58 = vmax.f32 %v130_v49, 0.0 }
  0x89   :  { %v74_v59 = vmax.f32 %v70_v50, 0.0  ;;  %v91_v60 = vmax.f32 %v87_v51, 0.0  ;;  %v112_v61 = vmax.f32 %v108_v52, 0.0  ;;  %v68_v62 = vpop.permute.xlu1 %67  ;;  %v63_v63 = vpop.permute.xlu0 %62  ;;  %v133_v5 = vmax.f32 %v129_v53, 0.0 }
  0x8a   :  { %v96_v0 = vadd.f32 %v92_v55, %v75_v54  ;;  %v73_v1 = vadd.f32 %v68_v62, %v49_v41  ;;  %v90_v2 = vadd.f32 %v86_v42, %v68_v62  ;;  %v111_v3 = vadd.f32 %v107_v43, %v68_v62 }
  0x8b   :  { %v95_v4 = vadd.f32 %v91_v60, %v74_v59  ;;  %v72_v6 = vadd.f32 %v63_v63, %v48_v32  ;;  %v89_v7 = vadd.f32 %v85_v33, %v63_v63  ;;  %v132_v11 = vadd.f32 %v128_v57, %v68_v62 }
  0x8c   :  { %v117_v8 = vadd.f32 %v113_v56, %v96_v0  ;;  %v77_v9 = vmax.f32 %v73_v1, 0.0  ;;  %v94_v10 = vmax.f32 %v90_v2, 0.0  ;;  %v115_v13 = vmax.f32 %v111_v3, 0.0 }
  0x8d   :  { %v116_v12 = vadd.f32 %v112_v61, %v95_v4  ;;  %v76_v14 = vmax.f32 %v72_v6, 0.0  ;;  %v93_v15 = vmax.f32 %v89_v7, 0.0  ;;  %v110_v18 = vadd.f32 %v106_v34, %v63_v63 }
  0x8e   :  { %v138_v16 = vadd.f32 %v134_v58, %v117_v8  ;;  %v98_v17 = vadd.f32 %v94_v10, %v77_v9  ;;  %v131_v19 = vadd.f32 %v127_v45, %v63_v63  ;;  %v136_v24 = vmax.f32 %v132_v11, 0.0 }
  0x8f   :  { %v137_v20 = vadd.f32 %v133_v5, %v116_v12  ;;  %v97_v21 = vadd.f32 %v93_v15, %v76_v14  ;;  %v114_v25 = vmax.f32 %v110_v18, 0.0 }
  0x90   :  { %v142_v22 = vmul.f32 0.25, %v138_v16  ;;  %v119_v23 = vadd.f32 %v115_v13, %v98_v17  ;;  %v135_v29 = vmax.f32 %v131_v19, 0.0 }
  0x91   :  { %v141_v26 = vmul.f32 0.25, %v137_v20  ;;  %v118_v28 = vadd.f32 %v114_v25, %v97_v21 }
  0x92   :  { %146 = vst [vmem:[%s276_s3 + $0x8] sm:$0xff] %v142_v22  ;;  %v140_v27 = vadd.f32 %v136_v24, %v119_v23 }
  0x93   :  { %145 = vst [vmem:[%s276_s3] sm:$0xff] %v141_v26  ;;  %v139_v31 = vadd.f32 %v135_v29, %v118_v28 }
  0x94   :  { %v144_v30 = vmul.f32 0.25, %v140_v27 }
  0x95   :  { %v143_v32 = vmul.f32 0.25, %v139_v31 }
  0x96   :  { %148 = vst [vmem:[%s276_s3 + $0x18] sm:$0xff] %v144_v30 }
  0x97   :  { %147 = vst [vmem:[%s276_s3 + $0x10] sm:$0xff] %v143_v32 }

// kernel: densenet_forward.25
= control target key start
LH: loop header
LB: loop body
LE: loop exit
PB: predicated region body
PF: predicated region fallthrough
CT: control target
= control target key end

     0   :  { %v340_v0 = vmov 0   ;;  %vm91_vm0 = vcmask 261120   ;;  %vm286_vm1 = vcmask 9216   ;;  %vm284_vm2 = vcmask 15360   ;;  %s448_s2 = inlined_call_operand.vmem [shape: f32[32,1], index: 2, kind: input, shape index: {}]   ;;  %s449_s1 = inlined_call_operand.vmem [shape: f32[32,1], index: 1, kind: input, shape index: {}]   ;;  %s450_s3 = inlined_call_operand.vmem [shape: f32[32,2], index: 3, kind: input, shape index: {}]   ;;  %s451_s5 = inlined_call_operand.vmem [shape: f32[10,1], index: 5, kind: input, shape index: {}]   ;;  %s452_s0 = inlined_call_operand.vmem [shape: f32[32,32], index: 0, kind: input, shape index: {}]   ;;  %s453_s4 = inlined_call_operand.vmem [shape: f32[10,32], index: 4, kind: input, shape index: {}]   ;;  %s454_s6 = inlined_call_operand.vmem [shape: f32[10,2], index: 6, kind: output, shape index: {}]  }
   0x1   :  { %339 = vset.pattern.permute.xlu1 %v340_v0  ;;  %338 = vset.pattern.permute.xlu0 %v340_v0  ;;  %v55_v1 = vld [vmem:[%s448_s2] sm:$0xff]  ;;  %v56_v3 = vld [vmem:[%s448_s2 + $0x8] sm:$0xff]  ;;  %v90_v5 = vld [vmem:[%s450_s3 + $0x18] sm:$0xff] }
   0x2   :  { %v27_v2 = vld [vmem:[%s449_s1] sm:$0xff]  ;;  %61 = vperm.xlu1 %339, %v55_v1   ;;  %v28_v4 = vld [vmem:[%s449_s1 + $0x8] sm:$0xff]  ;;  %312 = vmatprep.subr.mxu0 %v90_v5  ;;  %v89_v6 = vld [vmem:[%s450_s3 + $0x10] sm:$0xff] }
   0x3   :  { %33 = vperm.xlu0 %338, %v27_v2   ;;  %v30_v7 = vld [vmem:[%s449_s1 + $0x18] sm:$0xff]  ;;  %v29_v8 = vld [vmem:[%s449_s1 + $0x10] sm:$0xff]  ;;  %313 = vmatpush3.msra.mxu0 %v90_v5  ;;  %v88_v9 = vld [vmem:[%s450_s3 + $0x8] sm:$0xff] }
   0x4   :  { %314 = vmatprep.subr.mxu0 %v89_v6  ;;  %v87_v10 = vld [vmem:[%s450_s3] sm:$0xff]  ;;  %v58_v11 = vld [vmem:[%s448_s2 + $0x18] sm:$0xff]  ;;  %v57_v12 = vld [vmem:[%s448_s2 + $0x10] sm:$0xff] }
   0x5   :  { %315 = vmatpush3.msra.mxu0 %v89_v6  ;;  %v192_v13 = vld [vmem:[%s451_s5 + $0x8] sm:$0x3]  ;;  %v191_v14 = vld [vmem:[%s451_s5] sm:$0xff]  ;;  %v26_v27 = vld [vmem:[%s452_s0 + $0x18] sm:$0xff] }
   0x6   :  { %66 = vperm.xlu1 %339, %v56_v3   ;;  %316 = vmatprep.subr.mxu0 %v88_v9  ;;  %v23_v15 = vld [vmem:[%s452_s0] sm:$0xff]  ;;  %v24_v19 = vld [vmem:[%s452_s0 + $0x8] sm:$0xff]  ;;  %v25_v29 = vld [vmem:[%s452_s0 + $0x10] sm:$0xff] }
   0x7   :  { %38 = vperm.xlu0 %338, %v28_v4   ;;  %317 = vmatpush3.msra.mxu0 %v88_v9  ;;  %v189_v39 = vld [vmem:[%s453_s4] sm:$0xff]  ;;  %v190_v44 = vld [vmem:[%s453_s4 + $0x8] sm:$0x3] }
   0x8   :  { %318 = vmatprep.subr.mxu0 %v87_v10  ;;  %334 = vmatprep.mubr.msk.f32.mxu1 %vm91_vm0, %v189_v39 }
   0x9   :  { %319 = vmatpush3.msra.mxu0 %v87_v10 }
   0xa   :  { %48 = vperm.xlu1 %339, %v30_v7  }
   0xb   :  { %43 = vperm.xlu0 %338, %v29_v8  }
   0xe   :  { %76 = vperm.xlu1 %339, %v58_v11  }
   0xf   :  { %71 = vperm.xlu0 %338, %v57_v12  }
  0x12   :  { %200 = vperm.xlu1 %339, %v192_v13  }
  0x13   :  { %195 = vperm.xlu0 %338, %v191_v14  }
  0x7d   :  { %v62_v16 = vpop.permute.xlu1 %61 }
  0x7e   :  { %v34_v17 = vpop.permute.xlu0 %33 }
  0x7f   :  { %v51_v18 = vmul.f32 %v34_v17, %v23_v15 }
  0x81   :  { %v79_v20 = vadd.f32 %v62_v16, %v51_v18  ;;  %v67_v21 = vpop.permute.xlu1 %66 }
  0x82   :  { %v39_v22 = vpop.permute.xlu0 %38 }
  0x83   :  { %v52_v23 = vmul.f32 %v39_v22, %v24_v19  ;;  %v83_v24 = vmax.f32 %v79_v20, 0.0 }
  0x85   :  { %v80_v25 = vadd.f32 %v67_v21, %v52_v23  ;;  %320 = vmatprep.mubr.msk.f32.mxu0 %vm91_vm0, %v83_v24  ;;  %v49_v26 = vpop.permute.xlu1 %48 }
  0x86   :  { %v44_v28 = vpop.permute.xlu0 %43  ;;  %v54_v31 = vmul.f32 %v49_v26, %v26_v27 }
  0x87   :  { %v84_v30 = vmax.f32 %v80_v25, 0.0  ;;  %v53_v32 = vmul.f32 %v44_v28, %v25_v29 }
  0x89   :  { %321 = vmatmul.mubr.msk.f32.vlgmr.msra.gmra.mxu0 %vm91_vm0, %v84_v30  ;;  %v77_v33 = vpop.permute.xlu1 %76 }
  0x8a   :  { %v72_v34 = vpop.permute.xlu0 %71  ;;  %v82_v35 = vadd.f32 %v77_v33, %v54_v31 }
  0x8b   :  { %v81_v36 = vadd.f32 %v72_v34, %v53_v32 }
  0x8c   :  { %v86_v37 = vmax.f32 %v82_v35, 0.0 }
  0x8d   :  { %v85_v38 = vmax.f32 %v81_v36, 0.0  ;;  %v201_v45 = vpop.permute.xlu1 %200 }
  0x8e   :  { %v196_v48 = vpop.permute.xlu0 %195 }
  0x8f   :  { %323 = vmatprep.mubr.msk.f32.mxu0 %vm91_vm0, %v85_v38 }
  0x90   :  { %324 = vmatmul.mubr.msk.f32.gmra.mxu0 %vm91_vm0, %v86_v37 }
 0x149   :  { %v322_v40 = vpop.f32.mrf.mxu0 }
 0x14b   :  { %v170_v41 = vpop.f32.mrf.mxu0 }
 0x150   :  { %v325_v42 = vpop.f32.mrf.mxu0 }
 0x151   :  { %326 = vmatprep.subr.mxu1 %v325_v42 }
 0x152   :  { %v180_v43 = vpop.f32.mrf.mxu0  ;;  %327 = vmatpush3.msra.mxu1 %v325_v42 }
 0x153   :  { %328 = vmatprep.subr.mxu1 %v180_v43 }
 0x154   :  { %329 = vmatpush3.msra.mxu1 %v180_v43 }
 0x155   :  { %330 = vmatprep.subr.mxu1 %v322_v40 }
 0x156   :  { %331 = vmatpush3.msra.mxu1 %v322_v40 }
 0x157   :  { %332 = vmatprep.subr.mxu1 %v170_v41 }
 0x158   :  { %333 = vmatpush3.msra.mxu1 %v170_v41 }
 0x159   :  { %335 = vmatmul.mubr.msk.f32.vlgmr.msra.gmra.mxu1 %vm91_vm0, %v190_v44 }
 0x219   :  { %v336_v46 = vpop.f32.mrf.mxu1 }
 0x21a   :  { %v281_v47 = vadd.f32 %v336_v46, %v201_v45 }
 0x21b   :  { %v275_v49 = vpop.f32.mrf.mxu1 }
 0x21c   :  { %287 = vst.msk [vmem:[%s454_s6 + $0x8] sm:$0x3] %vm286_vm1, %v281_v47  ;;  %v276_v50 = vadd.f32 %v275_v49, %v196_v48 }
 0x21e   :  { %285 = vst.msk [vmem:[%s454_s6] sm:$0xff] %vm284_vm2, %v276_v50 }

</bundles_post_ra>
